<compile_context>
chip_gen: v7x
topology: tpu7x:2x2x1
jax: 0.10.0
libtpu: 0.0.40
codegen_flags: <defaults>
</compile_context>

<pallas_src>
import functools

import jax
import jax.numpy as jnp
from jax.experimental import pallas as pl
from jax.experimental.pallas import tpu as pltpu


def _patchnce_kernel(q_ref, k_ref, kpos_ref, loss_ref, m_sc, l_sc, pos_sc,
                     *, inv_t, neg_fill, p, tk, need_mask):
    # q_ref   : (TQ, Dp) q-row tile of the current batch element (native dtype)
    # k_ref   : (TK, Dp) streamed key tile of the current batch element
    # kpos_ref: (TQ, Dp) key rows aligned with this q tile (for the positive)
    # loss_ref: (1,  TQ) lane-dense per-patch loss for this q tile
    # m_sc/l_sc/pos_sc: (TQ, 1) f32 online-softmax state
    kk = pl.program_id(2)
    nk = pl.num_programs(2)

    @pl.when(kk == 0)
    def _init():
        # Fold the reference's exp(-10/T) (masked-diagonal) term into the
        # initial state: m = -10/T, l = exp(-10/T - m) = 1.
        m_sc[...] = jnp.full(m_sc.shape, neg_fill, jnp.float32)
        l_sc[...] = jnp.ones(l_sc.shape, jnp.float32)
        # Positive logit (scaled) as an O(TQ*Dp) row-wise dot in f32.
        qf = q_ref[...].astype(jnp.float32)
        kp = kpos_ref[...].astype(jnp.float32)
        pos_sc[...] = jnp.sum(qf * kp, axis=-1, keepdims=True) * jnp.float32(inv_t)

    # Similarity on the MXU in the native input dtype, f32 accumulation;
    # temperature applied to the f32 result (keeps bf16 inputs fast + precise).
    s = jax.lax.dot_general(
        q_ref[...], k_ref[...],
        dimension_numbers=(((1,), (1,)), ((), ())),
        preferred_element_type=jnp.float32) * jnp.float32(inv_t)      # (TQ, TK)

    if need_mask:
        # Only emitted when P was padded; kills padded key columns.
        col = jax.lax.broadcasted_iota(jnp.int32, s.shape, 1) + kk * tk
        s = jnp.where(col < p, s, jnp.float32(-1e30))

    # Online softmax update (denominator over all unmasked keys).
    m_prev = m_sc[...]
    m_new = jnp.maximum(m_prev, jnp.max(s, axis=-1, keepdims=True))    # (TQ, 1)
    alpha = jnp.exp(m_prev - m_new)
    l_sc[...] = alpha * l_sc[...] + jnp.sum(jnp.exp(s - m_new), axis=-1,
                                            keepdims=True)
    m_sc[...] = m_new

    @pl.when(kk == nk - 1)
    def _finalize():
        loss = (m_sc[...] + jnp.log(l_sc[...])) - pos_sc[...]          # (TQ, 1)
        loss_ref[0, :] = loss[:, 0].astype(loss_ref.dtype)


def _round_up(x, m):
    return ((x + m - 1) // m) * m


def _choose_tiles(p_pad, d_pad, itemsize, budget_bytes, max_tq, max_tk):
    """Largest TQ first (minimizes total key re-reads), then largest TK,
    such that the estimated per-step VMEM footprint fits the budget."""

    def footprint(tq, tk):
        return (2 * tq * d_pad * itemsize      # q tile, double-buffered
                + 2 * tq * d_pad * itemsize    # q-aligned key rows, double-buffered
                + 2 * tk * d_pad * itemsize    # streamed key tile, double-buffered
                + 3 * tq * tk * 4              # s / exp intermediates (f32)
                + 3 * tq * 128 * 4             # (TQ,1) f32 scratch, lane-padded
                + 2 * tq * 4)                  # output tile, double-buffered

    cands_q = [t for t in (1024, 512, 256, 128)
               if t <= min(p_pad, max_tq) and p_pad % t == 0]
    cands_k = [t for t in (2048, 1024, 512, 256, 128)
               if t <= min(p_pad, max_tk) and p_pad % t == 0]
    for tq in cands_q:
        for tk in cands_k:
            fp = footprint(tq, tk)
            if fp <= budget_bytes:
                return tq, tk, fp
    return 128, 128, footprint(128, 128)


def patch_nce_loss(
    feat_q,
    feat_k,
    *,
    batch_size,
    nce_T,
    nce_includes_all_negatives_from_minibatch=False,
    max_tq=1024,
    max_tk=2048,
    vmem_budget_bytes=32 * 1024 * 1024,
):
    """feat_q, feat_k: (N, D) with N = batch_size * npatches. Returns (N,) losses."""
    total, dim = feat_q.shape
    b = 1 if nce_includes_all_negatives_from_minibatch else batch_size
    assert total % b == 0, "total patch count must divide by batch_size"
    p = total // b

    d_pad = _round_up(dim, 128)
    p_pad = _round_up(p, 128)

    q = feat_q.reshape(b, p, dim)
    k = feat_k.reshape(b, p, dim)
    if d_pad != dim or p_pad != p:
        pad = ((0, 0), (0, p_pad - p), (0, d_pad - dim))
        q = jnp.pad(q, pad)
        k = jnp.pad(k, pad)

    itemsize = jnp.dtype(q.dtype).itemsize
    tq, tk, fp = _choose_tiles(p_pad, d_pad, itemsize,
                               vmem_budget_bytes, max_tq, max_tk)

    inv_t = float(1.0 / nce_T)
    kernel = functools.partial(
        _patchnce_kernel,
        inv_t=inv_t,
        neg_fill=float(-10.0 * inv_t),
        p=p,
        tk=tk,
        need_mask=(p_pad != p),
    )

    cost = pl.CostEstimate(
        flops=int(2 * b * p * p * dim),
        transcendentals=int(b * p * p),
        bytes_accessed=int(2 * b * p * dim * itemsize + b * p * 4),
    )
    vmem_limit = int(min(max(2 * fp, 16 * 1024 * 1024), 48 * 1024 * 1024))

    loss = pl.pallas_call(
        kernel,
        out_shape=jax.ShapeDtypeStruct((b, 1, p_pad), jnp.float32),
        grid_spec=pltpu.PrefetchScalarGridSpec(
            num_scalar_prefetch=0,
            grid=(b, p_pad // tq, p_pad // tk),
            in_specs=[
                # q: one (TQ, Dp) row tile, resident across the key axis
                pl.BlockSpec((None, tq, d_pad), lambda i, j, kk: (i, j, 0)),
                # k: streamed (TK, Dp) key tile (reduction axis)
                pl.BlockSpec((None, tk, d_pad), lambda i, j, kk: (i, kk, 0)),
                # k again: the key rows aligned with this q tile (positives)
                pl.BlockSpec((None, tq, d_pad), lambda i, j, kk: (i, j, 0)),
            ],
            # lane-dense output tile, resident across the key axis
            out_specs=pl.BlockSpec((None, 1, tq), lambda i, j, kk: (i, 0, j)),
            scratch_shapes=[
                pltpu.VMEM((tq, 1), jnp.float32),   # running max
                pltpu.VMEM((tq, 1), jnp.float32),   # running sum-exp
                pltpu.VMEM((tq, 1), jnp.float32),   # positive logit
            ],
        ),
        compiler_params=pltpu.CompilerParams(
            dimension_semantics=("parallel", "parallel", "arbitrary"),
            vmem_limit_bytes=vmem_limit,
        ),
        cost_estimate=cost,
    )(q, k, k)
    return loss[:, 0, :p].reshape(total)


def _patch_nce_loss_ref(feat_q, feat_k, *, batch_size, nce_T,
                        nce_includes_all_negatives_from_minibatch=False):
    """Pure-JAX reference mirroring the PyTorch forward (weighted=None)."""
    total, dim = feat_q.shape
    b = 1 if nce_includes_all_negatives_from_minibatch else batch_size
    p = total // b
    l_pos = jnp.sum(feat_q * feat_k, axis=1, keepdims=True)            # (N, 1)
    q = feat_q.reshape(b, p, dim)
    k = feat_k.reshape(b, p, dim)
    l_neg = jnp.einsum("bpd,bqd->bpq", q, k)                           # (B, P, P)
    eye = jnp.eye(p, dtype=bool)[None]
    l_neg = jnp.where(eye, -10.0, l_neg).reshape(-1, p)                # (N, P)
    out = jnp.concatenate([l_pos, l_neg], axis=1) / nce_T              # (N, 1+P)
    logz = jax.scipy.special.logsumexp(out, axis=1)
    return logz - out[:, 0]


def _normed(key, n, d):
    x = jax.random.normal(key, (n, d), dtype=jnp.float32)
    return x / jnp.linalg.norm(x, axis=1, keepdims=True)


if __name__ == "__main__":
    nce_T = 0.07
    key = jax.random.PRNGKey(0)
    k0, k1, k2, k3 = jax.random.split(key, 4)

    # small synthetic config: cfg.batch_size=2, npatches=8, dim=32
    B, P, D = 2, 8, 32
    N = B * P
    feat_q = _normed(k0, N, D)
    feat_k = _normed(k1, N, D)

    # default path (per-sample negatives)
    loss = patch_nce_loss(feat_q, feat_k, batch_size=B, nce_T=nce_T)
    loss = jax.block_until_ready(loss)
    ref = _patch_nce_loss_ref(feat_q, feat_k, batch_size=B, nce_T=nce_T)
    assert loss.shape == (N,)
    assert jnp.allclose(loss, ref, atol=1e-4, rtol=1e-4), (loss, ref)

    # all-negatives-from-minibatch path (b=1, P=N)
    loss_all = patch_nce_loss(
        feat_q, feat_k, batch_size=B, nce_T=nce_T,
        nce_includes_all_negatives_from_minibatch=True)
    loss_all = jax.block_until_ready(loss_all)
    ref_all = _patch_nce_loss_ref(
        feat_q, feat_k, batch_size=B, nce_T=nce_T,
        nce_includes_all_negatives_from_minibatch=True)
    assert jnp.allclose(loss_all, ref_all, atol=1e-4, rtol=1e-4), (loss_all, ref_all)

    # multi-tile path: forces several q-row tiles and key tiles (online softmax
    # accumulation + partial-tile masking): P=192 -> P_pad=256, TQ=TK=128.
    B2, P2, D2 = 2, 192, 96
    N2 = B2 * P2
    fq2 = _normed(k2, N2, D2)
    fk2 = _normed(k3, N2, D2)
    loss2 = patch_nce_loss(fq2, fk2, batch_size=B2, nce_T=nce_T,
                           max_tq=128, max_tk=128)
    loss2 = jax.block_until_ready(loss2)
    ref2 = _patch_nce_loss_ref(fq2, fk2, batch_size=B2, nce_T=nce_T)
    assert loss2.shape == (N2,)
    assert jnp.allclose(loss2, ref2, atol=1e-4, rtol=1e-4), (loss2, ref2)

    print("KERNEL_OK")
</pallas_src>

<mosaic_0001>
module attributes {stable_mosaic.version = 11 : i64} {
  func.func @_patchnce_kernel(%arg0: i32, %arg1: i32, %arg2: i32, %arg3: memref<1x128x128xf32, #tpu.memory_space<vmem>>, %arg4: memref<1x128x128xf32, #tpu.memory_space<vmem>>, %arg5: memref<1x128x128xf32, #tpu.memory_space<vmem>>, %arg6: memref<1x1x128xf32, #tpu.memory_space<vmem>>, %arg7: memref<128x1xf32, #tpu.memory_space<vmem>>, %arg8: memref<128x1xf32, #tpu.memory_space<vmem>>, %arg9: memref<128x1xf32, #tpu.memory_space<vmem>>) attributes {dimension_semantics = [#tpu.dimension_semantics<parallel>, #tpu.dimension_semantics<parallel>, #tpu.dimension_semantics<arbitrary>], iteration_bounds = array<i64: 2, 1, 1>, scalar_prefetch = 0 : i64, scratch_operands = 3 : i64, tpu.core_type = #tpu.core_type<tc>, window_params = [{transform_indices = @transform_0, window_bounds = array<i64: 1, 128, 128>}, {transform_indices = @transform_1, window_bounds = array<i64: 1, 128, 128>}, {transform_indices = @transform_2, window_bounds = array<i64: 1, 128, 128>}, {transform_indices = @transform_3, window_bounds = array<i64: 1, 1, 128>}]} {
    %c0_i32 = arith.constant 0 : i32
    %0 = arith.cmpi eq, %arg2, %c0_i32 : i32
    %1 = arith.extui %0 : i1 to i32
    %c0_i32_0 = arith.constant 0 : i32
    %2 = arith.cmpi ne, %1, %c0_i32_0 : i32
    scf.if %2 {
      %cst_20 = arith.constant -142.857147 : f32
      %37 = vector.broadcast %cst_20 : f32 to vector<128x1xf32>
      %c0_21 = arith.constant 0 : index
      %c0_22 = arith.constant 0 : index
      %38 = vector.load %arg7[%c0_21, %c0_22] : memref<128x1xf32, #tpu.memory_space<vmem>>, vector<128x1xf32>
      tpu.vector_store %arg7[%c0_21, %c0_22], %37 {strides = array<i32>} : memref<128x1xf32, #tpu.memory_space<vmem>>, vector<128x1xf32>,
      %cst_23 = arith.constant 1.000000e+00 : f32
      %39 = vector.broadcast %cst_23 : f32 to vector<128x1xf32>
      %c0_24 = arith.constant 0 : index
      %c0_25 = arith.constant 0 : index
      %40 = vector.load %arg8[%c0_24, %c0_25] : memref<128x1xf32, #tpu.memory_space<vmem>>, vector<128x1xf32>
      tpu.vector_store %arg8[%c0_24, %c0_25], %39 {strides = array<i32>} : memref<128x1xf32, #tpu.memory_space<vmem>>, vector<128x1xf32>,
      %c0_26 = arith.constant 0 : index
      %c0_27 = arith.constant 0 : index
      %c0_28 = arith.constant 0 : index
      %41 = vector.load %arg3[%c0_26, %c0_27, %c0_28] : memref<1x128x128xf32, #tpu.memory_space<vmem>>, vector<1x128x128xf32>
      %42 = vector.shape_cast %41 : vector<1x128x128xf32> to vector<128x128xf32>
      %c0_29 = arith.constant 0 : index
      %c0_30 = arith.constant 0 : index
      %c0_31 = arith.constant 0 : index
      %43 = vector.load %arg5[%c0_29, %c0_30, %c0_31] : memref<1x128x128xf32, #tpu.memory_space<vmem>>, vector<1x128x128xf32>
      %44 = vector.shape_cast %43 : vector<1x128x128xf32> to vector<128x128xf32>
      %45 = arith.mulf %42, %44 : vector<128x128xf32>
      %cst_32 = arith.constant dense<0.000000e+00> : vector<128xf32>
      %46 = vector.multi_reduction <add>, %45, %cst_32 [1] : vector<128x128xf32> to vector<128xf32>
      %47 = vector.shape_cast %46 : vector<128xf32> to vector<128x1xf32>
      %cst_33 = arith.constant 14.2857141 : f32
      %48 = vector.broadcast %cst_33 : f32 to vector<128x1xf32>
      %49 = arith.mulf %47, %48 : vector<128x1xf32>
      %c0_34 = arith.constant 0 : index
      %c0_35 = arith.constant 0 : index
      %50 = vector.load %arg9[%c0_34, %c0_35] : memref<128x1xf32, #tpu.memory_space<vmem>>, vector<128x1xf32>
      tpu.vector_store %arg9[%c0_34, %c0_35], %49 {strides = array<i32>} : memref<128x1xf32, #tpu.memory_space<vmem>>, vector<128x1xf32>,
    } else {
    }
    %c0 = arith.constant 0 : index
    %c0_1 = arith.constant 0 : index
    %c0_2 = arith.constant 0 : index
    %3 = vector.load %arg3[%c0, %c0_1, %c0_2] : memref<1x128x128xf32, #tpu.memory_space<vmem>>, vector<1x128x128xf32>
    %4 = vector.shape_cast %3 : vector<1x128x128xf32> to vector<128x128xf32>
    %c0_3 = arith.constant 0 : index
    %c0_4 = arith.constant 0 : index
    %c0_5 = arith.constant 0 : index
    %5 = vector.load %arg4[%c0_3, %c0_4, %c0_5] : memref<1x128x128xf32, #tpu.memory_space<vmem>>, vector<1x128x128xf32>
    %6 = vector.shape_cast %5 : vector<1x128x128xf32> to vector<128x128xf32>
    %cst = arith.constant dense<0.000000e+00> : vector<128x128xf32>
    %7 = tpu.matmul %4, %6, %cst {dimension_numbers = #tpu.dot_dimension_numbers<[1], [1], [0], [0], [0, 0, 1, 0], [], []>} : vector<128x128xf32>, vector<128x128xf32>, vector<128x128xf32> -> vector<128x128xf32>
    %cst_6 = arith.constant 14.2857141 : f32
    %8 = vector.broadcast %cst_6 : f32 to vector<128x128xf32>
    %9 = arith.mulf %7, %8 : vector<128x128xf32>
    %10 = tpu.iota {dimensions = array<i32: 1>} : vector<128x128xi32>
    %c128_i32 = arith.constant 128 : i32
    %11 = arith.muli %arg2, %c128_i32 : i32
    %12 = vector.broadcast %11 : i32 to vector<128x128xi32>
    %13 = arith.addi %10, %12 : vector<128x128xi32>
    %c8_i32 = arith.constant 8 : i32
    %14 = vector.broadcast %c8_i32 : i32 to vector<128x128xi32>
    %15 = arith.cmpi slt, %13, %14 : vector<128x128xi32>
    %cst_7 = arith.constant -1.000000e+30 : f32
    %16 = vector.broadcast %cst_7 : f32 to vector<128x128xf32>
    %17 = arith.select %15, %9, %16 : vector<128x128xi1>, vector<128x128xf32>
    %c0_8 = arith.constant 0 : index
    %c0_9 = arith.constant 0 : index
    %18 = vector.load %arg7[%c0_8, %c0_9] : memref<128x1xf32, #tpu.memory_space<vmem>>, vector<128x1xf32>
    %cst_10 = arith.constant dense<0xFF800000> : vector<128xf32>
    %19 = vector.multi_reduction <maximumf>, %17, %cst_10 [1] : vector<128x128xf32> to vector<128xf32>
    %20 = vector.shape_cast %19 : vector<128xf32> to vector<128x1xf32>
    %21 = arith.maximumf %18, %20 : vector<128x1xf32>
    %22 = arith.subf %18, %21 : vector<128x1xf32>
    %23 = math.exp %22 : vector<128x1xf32>
    %c0_11 = arith.constant 0 : index
    %c0_12 = arith.constant 0 : index
    %24 = vector.load %arg8[%c0_11, %c0_12] : memref<128x1xf32, #tpu.memory_space<vmem>>, vector<128x1xf32>
    %25 = arith.mulf %23, %24 : vector<128x1xf32>
    %26 = vector.broadcast %21 : vector<128x1xf32> to vector<128x128xf32>
    %27 = arith.subf %17, %26 : vector<128x128xf32>
    %28 = math.exp %27 : vector<128x128xf32>
    %cst_13 = arith.constant dense<0.000000e+00> : vector<128xf32>
    %29 = vector.multi_reduction <add>, %28, %cst_13 [1] : vector<128x128xf32> to vector<128xf32>
    %30 = vector.shape_cast %29 : vector<128xf32> to vector<128x1xf32>
    %31 = arith.addf %25, %30 : vector<128x1xf32>
    %c0_14 = arith.constant 0 : index
    %c0_15 = arith.constant 0 : index
    %32 = vector.load %arg8[%c0_14, %c0_15] : memref<128x1xf32, #tpu.memory_space<vmem>>, vector<128x1xf32>
    tpu.vector_store %arg8[%c0_14, %c0_15], %31 {strides = array<i32>} : memref<128x1xf32, #tpu.memory_space<vmem>>, vector<128x1xf32>,
    %c0_16 = arith.constant 0 : index
    %c0_17 = arith.constant 0 : index
    %33 = vector.load %arg7[%c0_16, %c0_17] : memref<128x1xf32, #tpu.memory_space<vmem>>, vector<128x1xf32>
    tpu.vector_store %arg7[%c0_16, %c0_17], %21 {strides = array<i32>} : memref<128x1xf32, #tpu.memory_space<vmem>>, vector<128x1xf32>,
    %c0_i32_18 = arith.constant 0 : i32
    %34 = arith.cmpi eq, %arg2, %c0_i32_18 : i32
    %35 = arith.extui %34 : i1 to i32
    %c0_i32_19 = arith.constant 0 : i32
    %36 = arith.cmpi ne, %35, %c0_i32_19 : i32
    scf.if %36 {
      %c0_20 = arith.constant 0 : index
      %c0_21 = arith.constant 0 : index
      %37 = vector.load %arg7[%c0_20, %c0_21] : memref<128x1xf32, #tpu.memory_space<vmem>>, vector<128x1xf32>
      %c0_22 = arith.constant 0 : index
      %c0_23 = arith.constant 0 : index
      %38 = vector.load %arg8[%c0_22, %c0_23] : memref<128x1xf32, #tpu.memory_space<vmem>>, vector<128x1xf32>
      %39 = math.log %38 : vector<128x1xf32>
      %40 = arith.addf %37, %39 : vector<128x1xf32>
      %c0_24 = arith.constant 0 : index
      %c0_25 = arith.constant 0 : index
      %41 = vector.load %arg9[%c0_24, %c0_25] : memref<128x1xf32, #tpu.memory_space<vmem>>, vector<128x1xf32>
      %42 = arith.subf %40, %41 : vector<128x1xf32>
      %43 = vector.shape_cast %42 : vector<128x1xf32> to vector<128xf32>
      %c0_26 = arith.constant 0 : index
      %c0_27 = arith.constant 0 : index
      %c0_28 = arith.constant 0 : index
      %44 = vector.load %arg6[%c0_26, %c0_27, %c0_28] : memref<1x1x128xf32, #tpu.memory_space<vmem>>, vector<1x1x128xf32>
      %45 = vector.shape_cast %44 : vector<1x1x128xf32> to vector<128xf32>
      %46 = vector.shape_cast %43 : vector<128xf32> to vector<1x1x128xf32>
      tpu.vector_store %arg6[%c0_26, %c0_27, %c0_28], %46 {strides = array<i32>} : memref<1x1x128xf32, #tpu.memory_space<vmem>>, vector<1x1x128xf32>,
    } else {
    }
    return
  }
  func.func @transform_0(%arg0: i32, %arg1: i32, %arg2: i32) -> (i32, i32, i32) {
    %c0_i32 = arith.constant 0 : i32
    %c0_i32_0 = arith.constant 0 : i32
    return %arg0, %arg1, %c0_i32 : i32, i32, i32
  }
  func.func @transform_1(%arg0: i32, %arg1: i32, %arg2: i32) -> (i32, i32, i32) {
    %c0_i32 = arith.constant 0 : i32
    %c0_i32_0 = arith.constant 0 : i32
    return %arg0, %arg2, %c0_i32 : i32, i32, i32
  }
  func.func @transform_2(%arg0: i32, %arg1: i32, %arg2: i32) -> (i32, i32, i32) {
    %c0_i32 = arith.constant 0 : i32
    %c0_i32_0 = arith.constant 0 : i32
    return %arg0, %arg1, %c0_i32 : i32, i32, i32
  }
  func.func @transform_3(%arg0: i32, %arg1: i32, %arg2: i32) -> (i32, i32, i32) {
    %c0_i32 = arith.constant 0 : i32
    %c0_i32_0 = arith.constant 0 : i32
    return %arg0, %c0_i32, %arg1 : i32, i32, i32
  }
}

</mosaic_0001>

<bundles_post_ra>
// kernel: tpu_custom_call.1
= control target key start
LH: loop header
LB: loop body
LE: loop exit
PB: predicated region body
PF: predicated region fallthrough
CT: control target
= control target key end

     0   :  { %s2806_s0 = inlined_call_operand.hbm [shape: f32[2,128,128], index: 0, kind: input, shape index: {}]   ;;  %s2807_s1 = inlined_call_operand.hbm [shape: f32[2,128,128], index: 1, kind: input, shape index: {}]   ;;  %s2808_s2 = inlined_call_operand.hbm [shape: f32[2,128,128], index: 2, kind: input, shape index: {}]   ;;  %s2809_s3 = inlined_call_operand.hbm [shape: f32[2,1,128], index: 3, kind: output, shape index: {}]  }
   0x1   :  { %2833 = sst [smem:[#allocation30_spill]] %s2807_s1 }
   0x2   :  { %8 = vsyncpa [#allocation6], 0 }
   0x3   :  { %10 = vsyncpa [#allocation6 + $0x1], 0 }
   0x4   :  { %11 = vsyncpa [#allocation9], 0 }
   0x5   :  { %13 = vsyncpa [#allocation9 + $0x1], 0 }
   0x6   :  { %14 = vsyncpa [#allocation7], 0 }
   0x7   :  { %16 = vsyncpa [#allocation7 + $0x1], 0  ;;  %s1993_s12 = smov 0   ;;  %s1995_s13 = smov 0  }
   0x8   :  { %s1997_s14 = smov 0   ;;  %s1999_s15 = smov 0  }
   0x9   :  { %s2001_s16 = smov 0   ;;  %s2003_s17 = smov 0  }
   0xa LB: > { %2834 = sst [smem:[#allocation15_spill]] %s1958_s16  ;;  %s2024_s18 = sadd.s32 4294967295, %s1962_s17   ;;  %s1962_s17 = sphi %s2003_s17, %s22_s17   ;;  %s1958_s16 = sphi %s2001_s16, %s2898_s16   ;;  %s1954_s15 = sphi %s1999_s15, %s2897_s15   ;;  %s1950_s14 = sphi %s1997_s14, %s2901_s14   ;;  %s1946_s13 = sphi %s1995_s13, %s2900_s13   ;;  %s1942_s12 = sphi %s1993_s12, %s2899_s12  }
   0xb   : > { %s1453_s19 = sadd.s32 4294967294, %s1962_s17   ;;  %s41_s20 = sadd.s32 1, %s1958_s16 }
   0xc   : > { %s50_s21 = sadd.s32 1, %s1950_s14  ;;  %p43_p0 = scmp.ge.s32.totalorder %s41_s20, 2 }
   0xd   : > { %p57_p1 = scmp.ne.s32.totalorder %s1950_s14, %s1946_s13  ;;  %p58_p2 = scmp.eq.s32.totalorder %s1962_s17, 0 }
   0xe   : > { %p63_p3 = scmp.ne.s32.totalorder %s1946_s13, %s1942_s12  ;;  %s2903_s20 = smov (%p43_p0, %s41_s20), 0 }
   0xf   : > { %2835 = sst [smem:[#allocation16_spill]] %s2903_s20  ;;  %p2036_p4 = por %p58_p2, %p57_p1 }
  0x10   : > { %p64_p5 = scmp.eq.s32.totalorder %s2024_s18, 0  ;;  %s45_s23 = ssub.s32 %s1958_s16, %s2903_s20 }
  0x11   : > { %p145_p6 = scmp.eq.s32.totalorder %s2024_s18, 1  ;;  %p48_p7 = scmp.eq.s32.totalorder %s45_s23, 0 }
  0x12   : > { %p2044_p8 = por %p64_p5, %p63_p3  ;;  %p151_p10 = scmp.eq.s32.totalorder %s1453_s19, 1 }
  0x13   : > { %p2048_p9 = por %p145_p6, %p57_p1  ;;  %p1633_p13 = scmp.lt.s32.totalorder %s1962_s17, 2 }
  0x14   : > { %s2837_s24 = scalar_select %p2044_p8, 1, 0 }
  0x15   : > { %s2838_s25 = scalar_select %p2048_p9, 1, 0 }
  0x16   : > { %s2053_s26 = scalar_select %p48_p7, %s1950_s14, %s50_s21  }
  0x17   : > { %p2055_p11 = por %p151_p10, %p63_p3  ;;  %s2812_s28 = sand.u32 1, %s1950_s14  }
  0x18   : > { %2839 = sst [smem:[#allocation17_spill]] %s2053_s26  ;;  %s2064_s29 = sshll.u32 %s2812_s28, 7 }
  0x19   : > { %s2840_s27 = scalar_select %p2055_p11, 1, 0 }
  0x1a   : > { %s2067_s30 = sshll.u32 %s1958_s16, 11  ;;  %p2071_p0 = pnand %p1633_p13, %p2036_p4 }
  0x1b   : > { %s194_s5 = sand.u32 1, %s1962_s17   ;;  %s2842_s1 = sld [smem:[#allocation30_spill]] }
  0x1c   : > { %s198_s9 = scalar_lea.vmem [#allocation8], %s2064_s29  ;;  %s2087_s11 = scalar_lea.sflag [#allocation9], %s194_s5 }
  0x1d   : > { %s207_s10 = sshll.u32 %s198_s9, 4  ;;  %p2093_p4 = pneg %p2071_p0  ;;  %s2084_s10 = int_to_ptr.vmem [resolvable:$true] %s207_s10 }
  0x21   : > { %s2080_s8 = scalar_lea.hbm %s2842_s1, %s2067_s30  ;;  %s1791_s6 = scalar_lea.hbm %s2842_s1, 4096 }
  0x22   : > { %s1786_s19 = scalar_lea.hbm %s2080_s8, 2048  ;;  %p1792_p7 = scmp.lt.u32.totalorder %s2080_s8, %s2842_s1 }
  0x23   : > { %p1787_p3 = scmp.ne.s32.totalorder %s2080_s8, %s1786_s19  ;;  %p1793_p10 = scmp.lt.u32.totalorder %s1791_s6, %s1786_s19 }
  0x24   : > { %p1795_p12 = scmp.lt.u32.totalorder %s1786_s19, %s2080_s8 }
  0x25   : > { %p1789_p5 = pnand %p2093_p4, %p1787_p3  ;;  %p1794_p13 = por %p1793_p10, %p1792_p7 }
  0x27   : > { %p1790_p6 = pneg %p1789_p5  ;;  %p1796_p1 = por %p1795_p12, %p1794_p13 }
  0x29   : > { %p1797_p2 = pnand %p1796_p1, %p1790_p6 }
  0x2b   : > { %1800 = shalt.err (!%p1797_p2)
}
  0x2c   : > { %s1801_s5 = scalar_lea.vmem %s2084_s10, 2048  ;;  %s1964_s22 = smov [#allocation8]  }
  0x2d   : > { %p1802_p3 = scmp.ne.s32.totalorder %s2084_s10, %s1801_s5  ;;  %s1806_s23 = sshll.u32 %s1964_s22, 4  ;;  %s1807_s23 = int_to_ptr.vmem [resolvable:$false] %s1806_s23 }
  0x2e   : > { %s1808_s7 = scalar_lea.vmem %s1807_s23, 4096  ;;  %p1809_p9 = scmp.lt.s32.totalorder %s2084_s10, %s1807_s23 }
  0x2f   : > { %p1804_p5 = pnand %p1802_p3, %p2093_p4  ;;  %p1810_p8 = scmp.lt.s32.totalorder %s1808_s7, %s1801_s5 }
  0x31   : > { %p1805_p11 = pneg %p1804_p5  ;;  %p1811_p7 = por %p1810_p8, %p1809_p9 }
  0x33   : > { %p1812_p10 = pnand %p1811_p7, %p1805_p11 }
  0x35   : > { %1815 = shalt.err (!%p1812_p10)
}
  0x36   : > { %s2813_s19 = smov 128   ;;  %s2815_s6 = smov 8  }
  0x37   : > { %1625 = dma.hbm_to_vmem [thread:$0]  (!%p2071_p0), %s2080_s8, 2048, %s2084_s10, %s2087_s11, %s2813_s19, %s2813_s19, %s2815_s6  }
  0x38   : > { %p2844_p8 = scmp.lt.s32.totalorder %s1962_s17, 3  ;;  %p2845_p9 = scmp.ge.s32.totalorder %s1962_s17, 1 }
  0x39   : > { %s2132_s23 = scalar_lea.hbm %s2806_s0, %s2067_s30  ;;  %s175_s7 = scalar_lea.vmem [#allocation5], %s2064_s29 }
  0x3a   : > { %p2124_p11 = pnand %p2845_p9, %p2844_p8  ;;  %s184_s28 = sshll.u32 %s175_s7, 4  ;;  %s2135_s28 = int_to_ptr.vmem [resolvable:$true] %s184_s28 }
  0x3b   : > { %s2141_s19 = scalar_lea.hbm %s2808_s2, %s2067_s30  ;;  %s2847_s6 = sand.u32 1, %s1950_s14  }
  0x3c   : > { %s2846_s9 = scalar_select %p2124_p11, 1, 0 }
  0x3d   : > { %s2145_s1 = scalar_lea.sflag [#allocation6], %s2847_s6  ;;  %s1816_s20 = scalar_lea.hbm %s2132_s23, 2048 }
  0x3e   : > { %p1817_p12 = scmp.ne.s32.totalorder %s2132_s23, %s1816_s20  ;;  %s1821_s16 = scalar_lea.hbm %s2806_s0, 4096 }
  0x3f   : > { %p1822_p6 = scmp.lt.u32.totalorder %s2132_s23, %s2806_s0  ;;  %p1823_p13 = scmp.lt.u32.totalorder %s1821_s16, %s1816_s20 }
  0x40   : > { %p1819_p1 = pnand %p1817_p12, %p2093_p4  ;;  %p1825_p5 = scmp.lt.u32.totalorder %s1816_s20, %s2132_s23 }
  0x41   : > { %p1824_p3 = por %p1823_p13, %p1822_p6 }
  0x42   : > { %p1820_p2 = pneg %p1819_p1 }
  0x43   : > { %p1826_p7 = por %p1825_p5, %p1824_p3 }
  0x45   : > { %p1827_p10 = pnand %p1826_p7, %p1820_p2 }
  0x47   : > { %1830 = shalt.err (!%p1827_p10)
}
  0x48   : > { %s1831_s30 = scalar_lea.vmem %s2135_s28, 2048  ;;  %s1967_s6 = smov [#allocation5]  }
  0x49   : > { %p1832_p8 = scmp.ne.s32.totalorder %s2135_s28, %s1831_s30  ;;  %s1836_s8 = sshll.u32 %s1967_s6, 4  ;;  %s1837_s8 = int_to_ptr.vmem [resolvable:$false] %s1836_s8 }
  0x4a   : > { %s1838_s26 = scalar_lea.vmem %s1837_s8, 4096  ;;  %p1839_p1 = scmp.lt.s32.totalorder %s2135_s28, %s1837_s8 }
  0x4b   : > { %p1834_p9 = pnand %p1832_p8, %p2093_p4  ;;  %p1840_p11 = scmp.lt.s32.totalorder %s1838_s26, %s1831_s30 }
  0x4d   : > { %p1835_p12 = pneg %p1834_p9  ;;  %p1841_p6 = por %p1840_p11, %p1839_p1 }
  0x4f   : > { %p1842_p13 = pnand %p1841_p6, %p1835_p12 }
  0x51   : > { %1845 = shalt.err (!%p1842_p13)
}
  0x52   : > { %s2848_s16 = smov 8   ;;  %s2849_s20 = smov 128  }
  0x53   : > { %1622 = dma.hbm_to_vmem [thread:$0]  (!%p2071_p0), %s2132_s23, 2048, %s2135_s28, %s2145_s1, %s2849_s20, %s2849_s20, %s2848_s16  }
  0x54   : > { %s221_s10 = scalar_lea.vmem [#allocation10], %s2064_s29  ;;  %s1846_s22 = scalar_lea.hbm %s2141_s19, 2048 }
  0x55   : > { %s230_s5 = sshll.u32 %s221_s10, 4  ;;  %p1847_p11 = scmp.ne.s32.totalorder %s2141_s19, %s1846_s22  ;;  %s2173_s5 = int_to_ptr.vmem [resolvable:$true] %s230_s5 }
  0x56   : > { %s1851_s6 = scalar_lea.hbm %s2808_s2, 4096  ;;  %p1852_p5 = scmp.lt.u32.totalorder %s2141_s19, %s2808_s2 }
  0x57   : > { %p1849_p2 = pnand %p1847_p11, %p2093_p4  ;;  %p1853_p7 = scmp.lt.u32.totalorder %s1851_s6, %s1846_s22 }
  0x58   : > { %p1855_p8 = scmp.lt.u32.totalorder %s1846_s22, %s2141_s19 }
  0x59   : > { %p1850_p3 = pneg %p1849_p2  ;;  %p1854_p10 = por %p1853_p7, %p1852_p5 }
  0x5b   : > { %p1856_p9 = por %p1855_p8, %p1854_p10 }
  0x5d   : > { %p1857_p12 = pnand %p1856_p9, %p1850_p3 }
  0x5f   : > { %1860 = shalt.err (!%p1857_p12)
}
  0x60   : > { %s1861_s1 = scalar_lea.vmem %s2173_s5, 2048  ;;  %s1968_s28 = smov [#allocation10]  }
  0x61   : > { %p1862_p1 = scmp.ne.s32.totalorder %s2173_s5, %s1861_s1  ;;  %s1866_s29 = sshll.u32 %s1968_s28, 4  ;;  %s1867_s29 = int_to_ptr.vmem [resolvable:$false] %s1866_s29 }
  0x62   : > { %s1868_s23 = scalar_lea.vmem %s1867_s29, 4096  ;;  %p1869_p11 = scmp.lt.s32.totalorder %s2173_s5, %s1867_s29 }
  0x63   : > { %p1864_p6 = pnand %p1862_p1, %p2093_p4  ;;  %p1870_p2 = scmp.lt.s32.totalorder %s1868_s23, %s1861_s1 }
  0x65   : > { %p1865_p13 = pneg %p1864_p6  ;;  %p1871_p5 = por %p1870_p2, %p1869_p11 }
  0x67   : > { %p1872_p7 = pnand %p1871_p5, %p1865_p13 }
  0x69   : > { %1875 = shalt.err (!%p1872_p7)
}
  0x6a   : > { %1628 = dma.hbm_to_vmem [thread:$0]  (!%p2071_p0), %s2141_s19, 2048, %s2173_s5, %s2087_s11, %s2849_s20, %s2849_s20, %s2848_s16  }
  0x6b   : > { %p2850_p4 = scmp.ne.s32.totalorder %s2846_s9, 0 }
  0x6d   : > { %242 = sbr.rel (%p2850_p4) target bundleno = 1072 (0x430), region = 32 }
  0x74   : > { %s2203_s21 = sand.u32 1, %s1946_s13   ;;  %p2851_p3 = scmp.ne.s32.totalorder %s2837_s24, 0 }
  0x75   : > { %s2206_s10 = sshll.u32 %s2203_s21, 7  ;;  %s245_s4 = scalar_lea.sflag [#allocation6], %s2203_s21 }
  0x76   : > { %s2210_s22 = scalar_lea.vmem [#allocation5], %s2206_s10 }
  0x77   : > { %1929 = dma.done.wait (%p2851_p3), %s245_s4, 2048  }
  0x78   : > { %1931 = vsyncadd (%p2851_p3), %s245_s4, 4294965248  ;;  %s253_s11 = sand.u32 1, %s2024_s18   ;;  %s2218_s9 = scalar_lea.vmem [#allocation8], %s2206_s10 }
  0x79   : > { %s254_s19 = scalar_lea.sflag [#allocation9], %s253_s11 }
  0x7a   : > { %1933 = dma.done.wait (%p2851_p3), %s254_s19, 4096  }
  0x7b   : > { %1935 = vsyncadd (%p2851_p3), %s254_s19, 4294963200  ;;  %v466_v0 = vld [vmem:[%s2218_s9] sm:$0xff]  ;;  %v467_v1 = vld [vmem:[%s2218_s9 + $0x8] sm:$0xff]  ;;  %vm305_vm0 = vcmask 7168   ;;  %v1969_v40 = vmov -142.85715   ;;  %v2819_v41 = vlaneseq }
  0x7c   : > { %v468_v2 = vld [vmem:[%s2218_s9 + $0x10] sm:$0xff]  ;;  %v1563_v3 = vpack.c.bf16 %v467_v1, %v466_v0  ;;  %v469_v4 = vld [vmem:[%s2218_s9 + $0x18] sm:$0xff]  ;;  %v2229_v6 = vld [vmem:[%s2210_s22] sm:$0xff]  ;;  %315 = vst.msk [vmem:[#allocation2 + $0x48] sm:$0xff] %vm305_vm0, %v1969_v40  ;;  %s2581_s18 = scalar_lea.vmem [#allocation10], %s2206_s10  ;;  %vm1206_vm2 = vcmask 130112  }
  0x7d   : > { %v1567_v5 = vpack.c.bf16 %v469_v4, %v468_v2  ;;  %v2232_v7 = vld [vmem:[%s2210_s22 + $0x40] sm:$0xff]  ;;  %v471_v9 = vld [vmem:[%s2218_s9 + $0x28] sm:$0xff]  ;;  %1539 = vmatprep.mubr.f32.mxu0 %v2229_v6  ;;  %v472_v11 = vld [vmem:[%s2218_s9 + $0x30] sm:$0xff]  ;;  %306 = vst.msk [vmem:[#allocation2] sm:$0xff] %vm305_vm0, %v1969_v40  ;;  %v2321_v42 = vand.u32 127, %v2819_v41  ;;  %vm1213_vm3 = vcmask 195712  }
  0x7e   : > { %1564 = vmatprep.subr.bf16.mxu0 %v1563_v3  ;;  %1595 = vmatprep.subr.bf16.mxu1 %v1563_v3  ;;  %v470_v8 = vld [vmem:[%s2218_s9 + $0x20] sm:$0xff]  ;;  %v473_v12 = vld [vmem:[%s2218_s9 + $0x38] sm:$0xff]  ;;  %v475_v15 = vld [vmem:[%s2218_s9 + $0x48] sm:$0xff]  ;;  %307 = vst.msk [vmem:[#allocation2 + $0x8] sm:$0xff] %vm305_vm0, %v1969_v40  ;;  %vm1220_vm4 = vcmask 261312   ;;  %vm1227_vm5 = vcmask 326912  }
  0x7f   : > { %1566 = vmatpush3.bf16.xpose.msra.mxu0 %v1563_v3  ;;  %1603 = vmatpush3.bf16.xpose.msra.mxu1 %v1563_v3  ;;  %v1571_v10 = vpack.c.bf16 %v471_v9, %v470_v8  ;;  %v1575_v13 = vpack.c.bf16 %v473_v12, %v472_v11  ;;  %v474_v14 = vld [vmem:[%s2218_s9 + $0x40] sm:$0xff]  ;;  %v476_v17 = vld [vmem:[%s2218_s9 + $0x50] sm:$0xff]  ;;  %v477_v18 = vld [vmem:[%s2218_s9 + $0x58] sm:$0xff]  ;;  %308 = vst.msk [vmem:[#allocation2 + $0x10] sm:$0xff] %vm305_vm0, %v1969_v40  ;;  %vm648_vm1 = vcmp.lt.s32.totalorder %v2321_v42, 8  ;;  %vm1234_vm6 = vcmask 392512  }
  0x80   : > { %1568 = vmatprep.subr.bf16.mxu0 %v1567_v5  ;;  %1596 = vmatprep.subr.bf16.mxu1 %v1567_v5  ;;  %v1579_v16 = vpack.c.bf16 %v475_v15, %v474_v14  ;;  %v1583_v19 = vpack.c.bf16 %v477_v18, %v476_v17  ;;  %v478_v20 = vld [vmem:[%s2218_s9 + $0x60] sm:$0xff]  ;;  %v479_v21 = vld [vmem:[%s2218_s9 + $0x68] sm:$0xff]  ;;  %v480_v23 = vld [vmem:[%s2218_s9 + $0x70] sm:$0xff]  ;;  %309 = vst.msk [vmem:[#allocation2 + $0x18] sm:$0xff] %vm305_vm0, %v1969_v40  ;;  %vm1241_vm7 = vcmask 458112   ;;  %vm1248_vm8 = vcmask 523712  }
  0x81   : > { %1551 = vmatprep.mubr.f32.mxu1 %v2232_v7  ;;  %v1587_v22 = vpack.c.bf16 %v479_v21, %v478_v20  ;;  %v481_v24 = vld [vmem:[%s2218_s9 + $0x78] sm:$0xff]  ;;  %v2249_v26 = vld [vmem:[%s2210_s22 + $0x8] sm:$0xff]  ;;  %v2255_v28 = vld [vmem:[%s2210_s22 + $0x10] sm:$0xff]  ;;  %310 = vst.msk [vmem:[#allocation2 + $0x20] sm:$0xff] %vm305_vm0, %v1969_v40  ;;  %vm1255_vm9 = vcmask 589312   ;;  %vm1262_vm10 = vcmask 654912  }
  0x82   : > { %v1591_v25 = vpack.c.bf16 %v481_v24, %v480_v23  ;;  %v2252_v27 = vld [vmem:[%s2210_s22 + $0x48] sm:$0xff]  ;;  %v2258_v29 = vld [vmem:[%s2210_s22 + $0x50] sm:$0xff]  ;;  %v2264_v30 = vld [vmem:[%s2210_s22 + $0x18] sm:$0xff]  ;;  %311 = vst.msk [vmem:[#allocation2 + $0x28] sm:$0xff] %vm305_vm0, %v1969_v40  ;;  %v1970_v23 = vmov 0   ;;  %vm1269_vm11 = vcmask 720512  }
  0x83   : > { %v2268_v31 = vld [vmem:[%s2210_s22 + $0x58] sm:$0xff]  ;;  %v2271_v32 = vld [vmem:[%s2210_s22 + $0x20] sm:$0xff]  ;;  %v2280_v34 = vld [vmem:[%s2210_s22 + $0x28] sm:$0xff]  ;;  %312 = vst.msk [vmem:[#allocation2 + $0x30] sm:$0xff] %vm305_vm0, %v1969_v40  ;;  %1688 = vset.pattern.permute.xlu1 %v1970_v23  ;;  %1689 = vset.pattern.permute.xlu0 %v1970_v23  ;;  %vm1276_vm12 = vcmask 786112   ;;  %vm1283_vm13 = vcmask 851712  }
  0x84   : > { %v2274_v33 = vld [vmem:[%s2210_s22 + $0x60] sm:$0xff]  ;;  %v2284_v35 = vld [vmem:[%s2210_s22 + $0x68] sm:$0xff]  ;;  %v2287_v36 = vld [vmem:[%s2210_s22 + $0x30] sm:$0xff]  ;;  %313 = vst.msk [vmem:[#allocation2 + $0x38] sm:$0xff] %vm305_vm0, %v1969_v40  ;;  %vm1290_vm14 = vcmask 917312   ;;  %vm1297_vm15 = vcmask 982912  }
  0x85   : > { %v2290_v37 = vld [vmem:[%s2210_s22 + $0x70] sm:$0xff]  ;;  %v2296_v38 = vld [vmem:[%s2210_s22 + $0x38] sm:$0xff]  ;;  %314 = vst.msk [vmem:[#allocation2 + $0x40] sm:$0xff] %vm305_vm0, %v1969_v40  ;;  %316 = vst.msk [vmem:[#allocation2 + $0x50] sm:$0xff] %vm305_vm0, %v1969_v40  ;;  %s1469_s24 = sshll.u32 %s1954_s15, 4  ;;  %s297_s16 = scalar_lea.vmem [#allocation11], %s2203_s21 }
  0x86   : > { %v2300_v39 = vld [vmem:[%s2210_s22 + $0x78] sm:$0xff]  ;;  %317 = vst.msk [vmem:[#allocation2 + $0x58] sm:$0xff] %vm305_vm0, %v1969_v40  ;;  %318 = vst.msk [vmem:[#allocation2 + $0x60] sm:$0xff] %vm305_vm0, %v1969_v40  ;;  %s1322_s20 = sshll.u32 %s297_s16, 4  ;;  %s2757_s30 = scalar_lea.hbm %s2809_s3, %s1469_s24  ;;  %s2759_s20 = int_to_ptr.vmem [resolvable:$true] %s1322_s20 }
  0x87   : > { %1570 = vmatpush3.bf16.xpose.msra.mxu0 %v1567_v5  ;;  %1604 = vmatpush3.bf16.xpose.msra.mxu1 %v1567_v5  ;;  %319 = vst.msk [vmem:[#allocation2 + $0x68] sm:$0xff] %vm305_vm0, %v1969_v40  ;;  %320 = vst.msk [vmem:[#allocation2 + $0x70] sm:$0xff] %vm305_vm0, %v1969_v40  ;;  %s1309_s15 = scalar_lea.sflag [#allocation7], %s2203_s21  ;;  %s1876_s6 = scalar_lea.vmem %s2759_s20, 16 }
  0x88   : > { %1572 = vmatprep.subr.bf16.mxu0 %v1571_v10  ;;  %1597 = vmatprep.subr.bf16.mxu1 %v1571_v10  ;;  %321 = vst.msk [vmem:[#allocation2 + $0x78] sm:$0xff] %vm305_vm0, %v1969_v40  ;;  %2852 = vst [vmem:[#allocation18_spill] sm:$0xff] %v2321_v42  ;;  %p1877_p0 = scmp.ne.s32.totalorder %s2759_s20, %s1876_s6  ;;  %p2893_p10 = scmp.ne.s32.totalorder %s2838_s25, 0 }
  0x89   : > { %s1972_s8 = smov [#allocation11]  }
  0x8a   : > { %p1878_p8 = pnand %p1877_p0, %p2893_p10  ;;  %s1880_s26 = sshll.u32 %s1972_s8, 4  ;;  %s1881_s26 = int_to_ptr.vmem [resolvable:$false] %s1880_s26 }
  0x8b   : > { %v2508_v41 = vld [vmem:[#allocation2 + $0x38] sm:$0xff]  ;;  %s1882_s1 = scalar_lea.vmem %s1881_s26, 32  ;;  %p1883_p12 = scmp.lt.s32.totalorder %s2759_s20, %s1881_s26 }
  0x8c   : > { %2854 = vst [vmem:[#allocation20_spill] sm:$0xff] %v2508_v41  ;;  %p1879_p9 = pneg %p1878_p8  ;;  %p1884_p1 = scmp.lt.s32.totalorder %s1882_s1, %s1876_s6 }
  0x8e   : > { %p1885_p6 = por %p1884_p1, %p1883_p12 }
  0x8f   : > { %1574 = vmatpush3.bf16.xpose.msra.mxu0 %v1571_v10  ;;  %1605 = vmatpush3.bf16.xpose.msra.mxu1 %v1571_v10 }
  0x90   : > { %1576 = vmatprep.subr.bf16.mxu0 %v1575_v13  ;;  %1598 = vmatprep.subr.bf16.mxu1 %v1575_v13  ;;  %p1886_p13 = pnand %p1885_p6, %p1879_p9 }
  0x97   : > { %1578 = vmatpush3.bf16.xpose.msra.mxu0 %v1575_v13  ;;  %1606 = vmatpush3.bf16.xpose.msra.mxu1 %v1575_v13 }
  0x98   : > { %1580 = vmatprep.subr.bf16.mxu0 %v1579_v16  ;;  %1599 = vmatprep.subr.bf16.mxu1 %v1579_v16 }
  0x9f   : > { %1582 = vmatpush3.bf16.xpose.msra.mxu0 %v1579_v16  ;;  %1607 = vmatpush3.bf16.xpose.msra.mxu1 %v1579_v16 }
  0xa0   : > { %1584 = vmatprep.subr.bf16.mxu0 %v1583_v19  ;;  %1600 = vmatprep.subr.bf16.mxu1 %v1583_v19 }
  0xa7   : > { %1586 = vmatpush3.bf16.xpose.msra.mxu0 %v1583_v19  ;;  %1608 = vmatpush3.bf16.xpose.msra.mxu1 %v1583_v19 }
  0xa8   : > { %1588 = vmatprep.subr.bf16.mxu0 %v1587_v22  ;;  %1601 = vmatprep.subr.bf16.mxu1 %v1587_v22 }
  0xaf   : > { %1590 = vmatpush3.bf16.xpose.msra.mxu0 %v1587_v22  ;;  %1609 = vmatpush3.bf16.xpose.msra.mxu1 %v1587_v22 }
  0xb0   : > { %1592 = vmatprep.subr.bf16.mxu0 %v1591_v25  ;;  %1602 = vmatprep.subr.bf16.mxu1 %v1591_v25 }
  0xb7   : > { %1594 = vmatpush3.bf16.xpose.msra.mxu0 %v1591_v25  ;;  %1610 = vmatpush3.bf16.xpose.msra.mxu1 %v1591_v25 }
  0xbe   : > { %1540 = vmatmul.mubr.f32.vlgmr.msra.gmra.mrb[0].mxu0 %v2249_v26  ;;  %1552 = vmatmul.mubr.f32.vlgmr.msra.gmra.mrb[0].mxu1 %v2252_v27 }
  0xbf   : > { %1542 = vmatprep.mubr.f32.mxu0 %v2255_v28  ;;  %1554 = vmatprep.mubr.f32.mxu1 %v2258_v29 }
  0xc2   : > { %1543 = vmatmul.mubr.f32.gmra.mrb[2].mxu0 %v2264_v30  ;;  %1555 = vmatmul.mubr.f32.gmra.mrb[2].mxu1 %v2268_v31 }
  0xc3   : > { %1545 = vmatprep.mubr.f32.mxu0 %v2271_v32  ;;  %1557 = vmatprep.mubr.f32.mxu1 %v2274_v33 }
  0xc6   : > { %1546 = vmatmul.mubr.f32.gmra.mrb[4].mxu0 %v2280_v34  ;;  %1558 = vmatmul.mubr.f32.gmra.mrb[4].mxu1 %v2284_v35 }
  0xc7   : > { %1548 = vmatprep.mubr.f32.mxu0 %v2287_v36  ;;  %1560 = vmatprep.mubr.f32.mxu1 %v2290_v37 }
  0xca   : > { %1549 = vmatmul.mubr.f32.gmra.mrb[6].mxu0 %v2296_v38  ;;  %1561 = vmatmul.mubr.f32.gmra.mrb[6].mxu1 %v2300_v39 }
 0x191   : > { %v1541_v43 = vpop.f32.mrb[0].mxu0  ;;  %v1553_v44 = vpop.f32.mrb[0].mxu1 }
 0x192   : > { %v628_v45 = vmul.f32 14.285714, %v1541_v43  ;;  %v636_v46 = vmul.f32 14.285714, %v1553_v44  ;;  %v548_v47 = vpop.f32.mrb[1].mxu0  ;;  %v588_v48 = vpop.f32.mrb[1].mxu1 }
 0x193   : > { %v627_v49 = vmul.f32 14.285714, %v548_v47  ;;  %v635_v58 = vmul.f32 14.285714, %v588_v48  ;;  %v1971_v44 = vmov 1.0   ;;  %v2420_v47 = vld [vmem:[#allocation2 + $0x48] sm:$0xff] }
 0x194   : > { %v2326_v50 = vsel %vm648_vm1, %v636_v46, -1e+30  ;;  %v2330_v51 = vsel %vm648_vm1, %v628_v45, -1e+30  ;;  %323 = vst.msk [vmem:[#allocation3 + $0x8] sm:$0xff] %vm305_vm0, %v1971_v44  ;;  %322 = vst.msk [vmem:[#allocation3] sm:$0xff] %vm305_vm0, %v1971_v44 }
 0x195   : > { %699 = vmax.xlane.f32.xlu1 %v2326_v50  ;;  %683 = vmax.xlane.f32.xlu0 %v2330_v51  ;;  %v1544_v52 = vpop.f32.mrb[2].mxu0  ;;  %v1556_v53 = vpop.f32.mrb[2].mxu1  ;;  %v2336_v59 = vsel %vm648_vm1, %v627_v49, -1e+30  ;;  %v2350_v4 = vsel %vm648_vm1, %v635_v58, -1e+30 }
 0x196   : > { %v630_v54 = vmul.f32 14.285714, %v1544_v52  ;;  %v638_v55 = vmul.f32 14.285714, %v1556_v53  ;;  %v558_v56 = vpop.f32.mrb[3].mxu0  ;;  %v598_v57 = vpop.f32.mrb[3].mxu1 }
 0x197   : > { %v637_v63 = vmul.f32 14.285714, %v598_v57  ;;  %v629_v3 = vmul.f32 14.285714, %v558_v56  ;;  %324 = vst.msk [vmem:[#allocation3 + $0x10] sm:$0xff] %vm305_vm0, %v1971_v44  ;;  %325 = vst.msk [vmem:[#allocation3 + $0x18] sm:$0xff] %vm305_vm0, %v1971_v44 }
 0x198   : > { %v2340_v60 = vsel %vm648_vm1, %v630_v54, -1e+30  ;;  %v2346_v0 = vsel %vm648_vm1, %v638_v55, -1e+30  ;;  %326 = vst.msk [vmem:[#allocation3 + $0x20] sm:$0xff] %vm305_vm0, %v1971_v44  ;;  %327 = vst.msk [vmem:[#allocation3 + $0x28] sm:$0xff] %vm305_vm0, %v1971_v44 }
 0x199   : > { %681 = vmax.xlane.f32.xlu0 %v2336_v59  ;;  %687 = vmax.xlane.f32.xlu1 %v2340_v60  ;;  %v1547_v61 = vpop.f32.mrb[4].mxu0  ;;  %v1559_v62 = vpop.f32.mrb[4].mxu1  ;;  %v2356_v10 = vsel %vm648_vm1, %v637_v63, -1e+30  ;;  %v2360_v14 = vsel %vm648_vm1, %v629_v3, -1e+30 }
 0x19a   : > { %v568_v1 = vpop.f32.mrb[5].mxu0  ;;  %v608_v2 = vpop.f32.mrb[5].mxu1  ;;  %v632_v5 = vmul.f32 14.285714, %v1547_v61  ;;  %v640_v19 = vmul.f32 14.285714, %v1559_v62 }
 0x19b   : > { %v631_v11 = vmul.f32 14.285714, %v568_v1  ;;  %v639_v21 = vmul.f32 14.285714, %v608_v2  ;;  %328 = vst.msk [vmem:[#allocation3 + $0x30] sm:$0xff] %vm305_vm0, %v1971_v44  ;;  %329 = vst.msk [vmem:[#allocation3 + $0x38] sm:$0xff] %vm305_vm0, %v1971_v44 }
 0x19c   : > { %v2366_v15 = vsel %vm648_vm1, %v632_v5, -1e+30  ;;  %v2385_v24 = vsel %vm648_vm1, %v640_v19, -1e+30  ;;  %330 = vst.msk [vmem:[#allocation3 + $0x40] sm:$0xff] %vm305_vm0, %v1971_v44  ;;  %331 = vst.msk [vmem:[#allocation3 + $0x48] sm:$0xff] %vm305_vm0, %v1971_v44 }
 0x19d   : > { %697 = vmax.xlane.f32.xlu0 %v2350_v4  ;;  %703 = vmax.xlane.f32.xlu1 %v2346_v0  ;;  %v1550_v8 = vpop.f32.mrb[6].mxu0  ;;  %v1562_v9 = vpop.f32.mrb[6].mxu1  ;;  %v2370_v17 = vsel %vm648_vm1, %v631_v11, -1e+30  ;;  %v2390_v40 = vsel %vm648_vm1, %v639_v21, -1e+30 }
 0x19e   : > { %v578_v12 = vpop.f32.mrb[7].mxu0  ;;  %v618_v13 = vpop.f32.mrb[7].mxu1  ;;  %v634_v16 = vmul.f32 14.285714, %v1550_v8  ;;  %v642_v25 = vmul.f32 14.285714, %v1562_v9 }
 0x19f   : > { %v633_v18 = vmul.f32 14.285714, %v578_v12  ;;  %v641_v43 = vmul.f32 14.285714, %v618_v13  ;;  %332 = vst.msk [vmem:[#allocation3 + $0x50] sm:$0xff] %vm305_vm0, %v1971_v44  ;;  %333 = vst.msk [vmem:[#allocation3 + $0x58] sm:$0xff] %vm305_vm0, %v1971_v44 }
 0x1a0   : > { %v2376_v20 = vsel %vm648_vm1, %v634_v16, -1e+30  ;;  %334 = vst.msk [vmem:[#allocation3 + $0x60] sm:$0xff] %vm305_vm0, %v1971_v44  ;;  %335 = vst.msk [vmem:[#allocation3 + $0x68] sm:$0xff] %vm305_vm0, %v1971_v44  ;;  %v2412_v45 = vsel %vm648_vm1, %v642_v25, -1e+30 }
 0x1a1   : > { %701 = vmax.xlane.f32.xlu0 %v2356_v10  ;;  %685 = vmax.xlane.f32.xlu1 %v2360_v14  ;;  %v2380_v22 = vsel %vm648_vm1, %v633_v18, -1e+30  ;;  %336 = vst.msk [vmem:[#allocation3 + $0x70] sm:$0xff] %vm305_vm0, %v1971_v44  ;;  %337 = vst.msk [vmem:[#allocation3 + $0x78] sm:$0xff] %vm305_vm0, %v1971_v44  ;;  %v2416_v46 = vsel %vm648_vm1, %v641_v43, -1e+30 }
 0x1a2   : > { %v2422_v48 = vld [vmem:[#allocation2 + $0x8] sm:$0xff]  ;;  %v2430_v55 = vld [vmem:[#allocation2] sm:$0xff]  ;;  %v2432_v56 = vld [vmem:[#allocation2 + $0x18] sm:$0xff] }
 0x1a3   : > { %v2449_v2 = vld [vmem:[#allocation2 + $0x40] sm:$0xff]  ;;  %v2451_v3 = vld [vmem:[#allocation2 + $0x58] sm:$0xff]  ;;  %v2468_v16 = vld [vmem:[#allocation2 + $0x50] sm:$0xff] }
 0x1a4   : > { %v2470_v18 = vld [vmem:[#allocation2 + $0x10] sm:$0xff]  ;;  %v2529_v57 = vld [vmem:[#allocation2 + $0x60] sm:$0xff]  ;;  %v2546_v19 = vld [vmem:[#allocation2 + $0x78] sm:$0xff] }
 0x1a5   : > { %691 = vmax.xlane.f32.xlu1 %v2366_v15  ;;  %689 = vmax.xlane.f32.xlu0 %v2370_v17  ;;  %v2510_v21 = vld [vmem:[#allocation2 + $0x30] sm:$0xff]  ;;  %2858 = vst [vmem:[#allocation24_spill] sm:$0xff] %v2529_v57  ;;  %2860 = vst [vmem:[#allocation26_spill] sm:$0xff] %v2546_v19 }
 0x1a6   : > { %2855 = vst [vmem:[#allocation21_spill] sm:$0xff] %v2510_v21 }
 0x1a9   : > { %695 = vmax.xlane.f32.xlu1 %v2376_v20  ;;  %693 = vmax.xlane.f32.xlu0 %v2380_v22 }
 0x1ad   : > { %707 = vmax.xlane.f32.xlu1 %v2385_v24  ;;  %705 = vmax.xlane.f32.xlu0 %v2390_v40 }
 0x1b1   : > { %711 = vmax.xlane.f32.xlu1 %v2412_v45  ;;  %709 = vmax.xlane.f32.xlu0 %v2416_v46 }
 0x222   : > { %v700_v49 = vpop.xlane.xlu1 %699  ;;  %v684_v52 = vpop.xlane.xlu0 %683 }
 0x223   : > { %v2425_v53 = vmax.f32 %v2420_v47, %v700_v49  ;;  %v2428_v54 = vmax.f32 %v2422_v48, %v684_v52  ;;  %v2488_v49 = vld [vmem:[#allocation2 + $0x28] sm:$0xff]  ;;  %v2490_v52 = vld [vmem:[#allocation2 + $0x20] sm:$0xff] }
 0x224   : > { %2853 = vst [vmem:[#allocation19_spill] sm:$0xff] %v2490_v52 }
 0x225   : > { %1011 = vst.msk [vmem:[#allocation2 + $0x48] sm:$0xff] %vm305_vm0, %v2425_v53  ;;  %1003 = vst.msk [vmem:[#allocation2 + $0x8] sm:$0xff] %vm305_vm0, %v2428_v54  ;;  %816 = vperm.xlu1 %1688, %v2428_v54  }
 0x226   : > { %v682_v61 = vpop.xlane.xlu0 %681  ;;  %v688_v62 = vpop.xlane.xlu1 %687 }
 0x227   : > { %v2444_v63 = vmax.f32 %v2430_v55, %v682_v61  ;;  %v2447_v1 = vmax.f32 %v2432_v56, %v688_v62  ;;  %v2527_v61 = vld [vmem:[#allocation2 + $0x68] sm:$0xff] }
 0x228   : > { %2857 = vst [vmem:[#allocation23_spill] sm:$0xff] %v2527_v61 }
 0x229   : > { %1002 = vst.msk [vmem:[#allocation2] sm:$0xff] %vm305_vm0, %v2444_v63  ;;  %1005 = vst.msk [vmem:[#allocation2 + $0x18] sm:$0xff] %vm305_vm0, %v2447_v1  ;;  %811 = vperm.xlu0 %1689, %v2444_v63  }
 0x22a   : > { %v698_v9 = vpop.xlane.xlu0 %697  ;;  %v704_v11 = vpop.xlane.xlu1 %703 }
 0x22b   : > { %v2463_v12 = vmax.f32 %v2449_v2, %v698_v9  ;;  %v2466_v13 = vmax.f32 %v2451_v3, %v704_v11 }
 0x22d   : > { %1010 = vst.msk [vmem:[#allocation2 + $0x40] sm:$0xff] %vm305_vm0, %v2463_v12  ;;  %1013 = vst.msk [vmem:[#allocation2 + $0x58] sm:$0xff] %vm305_vm0, %v2466_v13  ;;  %851 = vperm.xlu1 %1688, %v2463_v12   ;;  %856 = vperm.xlu0 %1689, %v2425_v53  }
 0x22e   : > { %v702_v23 = vpop.xlane.xlu0 %701  ;;  %v686_v25 = vpop.xlane.xlu1 %685 }
 0x22f   : > { %v2483_v43 = vmax.f32 %v2468_v16, %v702_v23  ;;  %v2486_v44 = vmax.f32 %v2470_v18, %v686_v25 }
 0x231   : > { %1012 = vst.msk [vmem:[#allocation2 + $0x50] sm:$0xff] %vm305_vm0, %v2483_v43  ;;  %1004 = vst.msk [vmem:[#allocation2 + $0x10] sm:$0xff] %vm305_vm0, %v2486_v44  ;;  %826 = vperm.xlu1 %1688, %v2447_v1   ;;  %866 = vperm.xlu0 %1689, %v2466_v13  }
 0x232   : > { %v692_v9 = vpop.xlane.xlu1 %691  ;;  %v690_v11 = vpop.xlane.xlu0 %689 }
 0x233   : > { %v2503_v23 = vmax.f32 %v2488_v49, %v692_v9  ;;  %v2506_v25 = vmax.f32 %v2490_v52, %v690_v11 }
 0x235   : > { %1007 = vst.msk [vmem:[#allocation2 + $0x28] sm:$0xff] %vm305_vm0, %v2503_v23  ;;  %821 = vperm.xlu1 %1688, %v2486_v44   ;;  %1006 = vst.msk [vmem:[#allocation2 + $0x20] sm:$0xff] %vm305_vm0, %v2506_v25 }
 0x236   : > { %v696_v9 = vpop.xlane.xlu1 %695  ;;  %v694_v11 = vpop.xlane.xlu0 %693 }
 0x237   : > { %v2522_v62 = vmax.f32 %v2508_v41, %v696_v9  ;;  %v2525_v5 = vmax.f32 %v2510_v21, %v694_v11  ;;  %v2548_v41 = vld [vmem:[#allocation2 + $0x70] sm:$0xff] }
 0x238   : > { %2861 = vst [vmem:[#allocation27_spill] sm:$0xff] %v2548_v41 }
 0x239   : > { %2856 = vst [vmem:[#allocation22_spill] sm:$0xff] %v2525_v5  ;;  %1009 = vst.msk [vmem:[#allocation2 + $0x38] sm:$0xff] %vm305_vm0, %v2522_v62  ;;  %861 = vperm.xlu1 %1688, %v2483_v43  }
 0x23a   : > { %1008 = vst.msk [vmem:[#allocation2 + $0x30] sm:$0xff] %vm305_vm0, %v2525_v5  ;;  %v708_v9 = vpop.xlane.xlu1 %707  ;;  %v706_v11 = vpop.xlane.xlu0 %705 }
 0x23b   : > { %v2541_v58 = vmax.f32 %v2527_v61, %v708_v9  ;;  %v2544_v42 = vmax.f32 %v2529_v57, %v706_v11  ;;  %v356_v9 = vld [vmem:[%s2581_s18 + $0x10] sm:$0xff]  ;;  %v357_v57 = vld [vmem:[%s2581_s18 + $0x18] sm:$0xff] }
 0x23c   : > { %v372_v61 = vmul.f32 %v2255_v28, %v356_v9 }
 0x23d   : > { %2859 = vst [vmem:[#allocation25_spill] sm:$0xff] %v2544_v42  ;;  %1015 = vst.msk [vmem:[#allocation2 + $0x68] sm:$0xff] %vm305_vm0, %v2541_v58  ;;  %836 = vperm.xlu1 %1688, %v2503_v23   ;;  %876 = vperm.xlu0 %1689, %v2541_v58  }
 0x23e   : > { %1014 = vst.msk [vmem:[#allocation2 + $0x60] sm:$0xff] %vm305_vm0, %v2544_v42  ;;  %v712_v11 = vpop.xlane.xlu1 %711  ;;  %v710_v8 = vpop.xlane.xlu0 %709 }
 0x23f   : > { %v2561_v21 = vmax.f32 %v2546_v19, %v712_v11  ;;  %v2564_v52 = vmax.f32 %v2548_v41, %v710_v8  ;;  %v354_v8 = vld [vmem:[%s2581_s18] sm:$0xff]  ;;  %v359_v19 = vld [vmem:[%s2581_s18 + $0x28] sm:$0xff] }
 0x240   : > { %v370_v11 = vmul.f32 %v2229_v6, %v354_v8  ;;  %v358_v41 = vld [vmem:[%s2581_s18 + $0x20] sm:$0xff]  ;;  %v375_v6 = vmul.f32 %v2280_v34, %v359_v19 }
 0x241   : > { %2862 = vst [vmem:[#allocation28_spill] sm:$0xff] %v2561_v21  ;;  %2863 = vst [vmem:[#allocation29_spill] sm:$0xff] %v2564_v52  ;;  %831 = vperm.xlu1 %1688, %v2506_v25   ;;  %886 = vperm.xlu0 %1689, %v2561_v21  }
 0x242   : > { %1017 = vst.msk [vmem:[#allocation2 + $0x78] sm:$0xff] %vm305_vm0, %v2561_v21  ;;  %1016 = vst.msk [vmem:[#allocation2 + $0x70] sm:$0xff] %vm305_vm0, %v2564_v52  ;;  %v373_v21 = vmul.f32 %v2264_v30, %v357_v57 }
 0x245   : > { %846 = vperm.xlu1 %1688, %v2522_v62  }
 0x249   : > { %841 = vperm.xlu1 %1688, %v2525_v5   ;;  %v374_v5 = vmul.f32 %v2271_v32, %v358_v41 }
 0x24d   : > { %871 = vperm.xlu1 %1688, %v2544_v42  }
 0x251   : > { %881 = vperm.xlu1 %1688, %v2564_v52   ;;  %v355_v52 = vld [vmem:[%s2581_s18 + $0x8] sm:$0xff] }
 0x252   : > { %v371_v42 = vmul.f32 %v2249_v26, %v355_v52 }
 0x260   : > { %386 = vadd.xlane.f32.xlu0 %v370_v11 }
 0x264   : > { %390 = vadd.xlane.f32.xlu0 %v372_v61 }
 0x268   : > { %394 = vadd.xlane.f32.xlu0 %v374_v5 }
 0x275   : > { %388 = vadd.xlane.f32.xlu1 %v371_v42 }
 0x279   : > { %392 = vadd.xlane.f32.xlu1 %v373_v21 }
 0x27d   : > { %396 = vadd.xlane.f32.xlu1 %v375_v6 }
 0x2a4   : > { %v817_v8 = vpop.permute.xlu1 %816 }
 0x2a5   : > { %v890_v28 = vsub.f32 %v2330_v51, %v817_v8 }
 0x2a7   : > { %v907_v9 = vmul.f32 1.442695, %v890_v28 }
 0x2a8   : > { %v812_v61 = vpop.permute.xlu0 %811 }
 0x2a9   : > { %1690 = vpow2.f32 %v907_v9  ;;  %v889_v42 = vsub.f32 %v2336_v59, %v812_v61 }
 0x2ab   : > { %v905_v34 = vmul.f32 1.442695, %v889_v42 }
 0x2ac   : > { %v852_v32 = vpop.permute.xlu1 %851  ;;  %v857_v41 = vpop.permute.xlu0 %856 }
 0x2ad   : > { %v897_v5 = vsub.f32 %v2350_v4, %v852_v32  ;;  %v898_v26 = vsub.f32 %v2326_v50, %v857_v41 }
 0x2af   : > { %v921_v30 = vmul.f32 1.442695, %v897_v5  ;;  %v923_v57 = vmul.f32 1.442695, %v898_v26 }
 0x2b0   : > { %v827_v21 = vpop.permute.xlu1 %826  ;;  %v867_v52 = vpop.permute.xlu0 %866 }
 0x2b1   : > { %1692 = vpow2.f32 %v921_v30  ;;  %v892_v19 = vsub.f32 %v2340_v60, %v827_v21  ;;  %v900_v50 = vsub.f32 %v2346_v0, %v867_v52 }
 0x2b2   : > { %1694 = vpow2.f32 %v923_v57 }
 0x2b3   : > { %v1691_v51 = vpop.eup %1690  ;;  %1696 = vpow2.f32 %v905_v34  ;;  %v911_v4 = vmul.f32 1.442695, %v892_v19  ;;  %v927_v9 = vmul.f32 1.442695, %v900_v50 }
 0x2b4   : > { %v822_v11 = vpop.permute.xlu1 %821  ;;  %939 = vadd.xlane.f32.xlu0 %v1691_v51 }
 0x2b5   : > { %v891_v6 = vsub.f32 %v2360_v14, %v822_v11 }
 0x2b7   : > { %v909_v8 = vmul.f32 1.442695, %v891_v6 }
 0x2b8   : > { %v862_v59 = vpop.permute.xlu1 %861 }
 0x2b9   : > { %1698 = vpow2.f32 %v909_v8  ;;  %v899_v28 = vsub.f32 %v2356_v10, %v862_v59 }
 0x2ba   : > { %1700 = vpow2.f32 %v911_v4 }
 0x2bb   : > { %v1693_v61 = vpop.eup %1692  ;;  %v925_v32 = vmul.f32 1.442695, %v899_v28 }
 0x2bc   : > { %v1695_v60 = vpop.eup %1694  ;;  %v837_v41 = vpop.permute.xlu1 %836  ;;  %953 = vadd.xlane.f32.xlu0 %v1693_v61 }
 0x2bd   : > { %v877_v5 = vpop.permute.xlu0 %876  ;;  %1702 = vpow2.f32 %v925_v32  ;;  %v894_v14 = vsub.f32 %v2366_v15, %v837_v41  ;;  %955 = vadd.xlane.f32.xlu1 %v1695_v60  ;;  %v1697_v42 = vpop.eup %1696 }
 0x2be   : > { %1704 = vpow2.f32 %v927_v9  ;;  %v902_v0 = vsub.f32 %v2385_v24, %v877_v5  ;;  %v361_v5 = vld [vmem:[%s2581_s18 + $0x38] sm:$0xff] }
 0x2bf   : > { %v915_v26 = vmul.f32 1.442695, %v894_v14 }
 0x2c0   : > { %v832_v30 = vpop.permute.xlu1 %831  ;;  %v931_v57 = vmul.f32 1.442695, %v902_v0  ;;  %v377_v0 = vmul.f32 %v2296_v38, %v361_v5  ;;  %v367_v38 = vld [vmem:[%s2581_s18 + $0x68] sm:$0xff]  ;;  %v2867_v5 = vsub.f32 %v2430_v55, %v2444_v63  ;;  %v2871_v55 = vsub.f32 %v2451_v3, %v2466_v13  ;;  %v777_v3 = vld [vmem:[#allocation3] sm:$0xff] }
 0x2c1   : > { %1706 = vpow2.f32 %v915_v26  ;;  %v893_v10 = vsub.f32 %v2370_v17, %v832_v30  ;;  %937 = vadd.xlane.f32.xlu1 %v1697_v42  ;;  %v887_v19 = vpop.permute.xlu0 %886  ;;  %v363_v26 = vld [vmem:[%s2581_s18 + $0x48] sm:$0xff] }
 0x2c2   : > { %v904_v24 = vsub.f32 %v2412_v45, %v887_v19  ;;  %v379_v30 = vmul.f32 %v2252_v27, %v363_v26  ;;  %v383_v19 = vmul.f32 %v2284_v35, %v367_v38  ;;  %v767_v63 = vmul.f32 1.442695, %v2871_v55  ;;  %v2873_v13 = vld [vmem:[#allocation19_spill] sm:$0xff] }
 0x2c3   : > { %v1699_v21 = vpop.eup %1698  ;;  %v913_v34 = vmul.f32 1.442695, %v893_v10  ;;  %v360_v10 = vld [vmem:[%s2581_s18 + $0x30] sm:$0xff] }
 0x2c4   : > { %v1701_v51 = vpop.eup %1700  ;;  %v847_v52 = vpop.permute.xlu1 %846  ;;  %941 = vadd.xlane.f32.xlu0 %v1699_v21  ;;  %v935_v17 = vmul.f32 1.442695, %v904_v24  ;;  %v376_v21 = vmul.f32 %v2287_v36, %v360_v10  ;;  %v364_v36 = vld [vmem:[%s2581_s18 + $0x50] sm:$0xff] }
 0x2c5   : > { %1708 = vpow2.f32 %v913_v34  ;;  %v896_v15 = vsub.f32 %v2376_v20, %v847_v52  ;;  %943 = vadd.xlane.f32.xlu1 %v1701_v51  ;;  %v362_v51 = vld [vmem:[%s2581_s18 + $0x40] sm:$0xff]  ;;  %v369_v52 = vld [vmem:[%s2581_s18 + $0x78] sm:$0xff] }
 0x2c6   : > { %1710 = vpow2.f32 %v931_v57  ;;  %v365_v57 = vld [vmem:[%s2581_s18 + $0x58] sm:$0xff]  ;;  %v385_v24 = vmul.f32 %v2300_v39, %v369_v52 }
 0x2c7   : > { %v1703_v11 = vpop.eup %1702  ;;  %v919_v6 = vmul.f32 1.442695, %v896_v15  ;;  %v381_v34 = vmul.f32 %v2268_v31, %v365_v57  ;;  %v378_v15 = vmul.f32 %v2232_v7, %v362_v51  ;;  %v380_v31 = vmul.f32 %v2258_v29, %v364_v36 }
 0x2c8   : > { %v1705_v4 = vpop.eup %1704  ;;  %v842_v50 = vpop.permute.xlu1 %841  ;;  %957 = vadd.xlane.f32.xlu0 %v1703_v11  ;;  %v366_v11 = vld [vmem:[%s2581_s18 + $0x60] sm:$0xff] }
 0x2c9   : > { %1712 = vpow2.f32 %v919_v6  ;;  %959 = vadd.xlane.f32.xlu1 %v1705_v4  ;;  %v895_v28 = vsub.f32 %v2380_v22, %v842_v50  ;;  %v382_v35 = vmul.f32 %v2274_v33, %v366_v11  ;;  %v368_v50 = vld [vmem:[%s2581_s18 + $0x70] sm:$0xff] }
 0x2ca   : > { %1714 = vpow2.f32 %v935_v17  ;;  %v384_v7 = vmul.f32 %v2290_v37, %v368_v50  ;;  %v2864_v37 = vsub.f32 %v2422_v48, %v2428_v54  ;;  %v2868_v48 = vsub.f32 %v2470_v18, %v2486_v44  ;;  %v785_v44 = vld [vmem:[#allocation3 + $0x40] sm:$0xff] }
 0x2cb   : > { %v1707_v8 = vpop.eup %1706  ;;  %v917_v32 = vmul.f32 1.442695, %v895_v28 }
 0x2cc   : > { %v872_v59 = vpop.permute.xlu1 %871  ;;  %v749_v54 = vmul.f32 1.442695, %v2868_v48  ;;  %v2882_v48 = vld [vmem:[#allocation24_spill] sm:$0xff] }
 0x2cd   : > { %v901_v9 = vsub.f32 %v2390_v40, %v872_v59  ;;  %947 = vadd.xlane.f32.xlu1 %v1707_v8 }
 0x2cf   : > { %v1709_v20 = vpop.eup %1708  ;;  %v929_v61 = vmul.f32 1.442695, %v901_v9 }
 0x2d0   : > { %v1711_v45 = vpop.eup %1710  ;;  %945 = vadd.xlane.f32.xlu0 %v1709_v20  ;;  %v882_v60 = vpop.permute.xlu1 %881 }
 0x2d1   : > { %1716 = vpow2.f32 %v929_v61  ;;  %963 = vadd.xlane.f32.xlu1 %v1711_v45  ;;  %v903_v22 = vsub.f32 %v2416_v46, %v882_v60  ;;  %v747_v45 = vmul.f32 1.442695, %v2864_v37  ;;  %v2880_v37 = vld [vmem:[#allocation28_spill] sm:$0xff] }
 0x2d2   : > { %1718 = vpow2.f32 %v917_v32  ;;  %v2865_v32 = vsub.f32 %v2449_v2, %v2463_v12  ;;  %v2869_v2 = vsub.f32 %v2432_v56, %v2447_v1  ;;  %v786_v56 = vld [vmem:[#allocation3 + $0x48] sm:$0xff]  ;;  %v2872_v1 = vsub.f32 %v2488_v49, %v2503_v23 }
 0x2d3   : > { %v1713_v41 = vpop.eup %1712  ;;  %v933_v14 = vmul.f32 1.442695, %v903_v22 }
 0x2d4   : > { %v1715_v40 = vpop.eup %1714  ;;  %v761_v60 = vmul.f32 1.442695, %v2865_v32  ;;  %v751_v12 = vmul.f32 1.442695, %v2869_v2  ;;  %v755_v57 = vmul.f32 1.442695, %v2872_v1 }
 0x2d5   : > { %951 = vadd.xlane.f32.xlu1 %v1713_v41  ;;  %1720 = vpow2.f32 %v933_v14  ;;  %v2866_v41 = vsub.f32 %v2420_v47, %v2425_v53  ;;  %v2885_v1 = vld [vmem:[#allocation21_spill] sm:$0xff] }
 0x2d6   : > { %1722 = vpow2.f32 %v747_v45 }
 0x2d7   : > { %v763_v22 = vmul.f32 1.442695, %v2866_v41  ;;  %1724 = vpow2.f32 %v761_v60 }
 0x2d9   : > { %967 = vadd.xlane.f32.xlu1 %v1715_v40  ;;  %1726 = vpow2.f32 %v763_v22  ;;  %v745_v40 = vmul.f32 1.442695, %v2867_v5 }
 0x2db   : > { %v1717_v42 = vpop.eup %1716  ;;  %1728 = vpow2.f32 %v745_v40 }
 0x2dc   : > { %961 = vadd.xlane.f32.xlu0 %v1717_v42  ;;  %v1719_v46 = vpop.eup %1718  ;;  %v2870_v42 = vsub.f32 %v2468_v16, %v2483_v43  ;;  %1730 = vpow2.f32 %v749_v54  ;;  %v2883_v54 = vld [vmem:[#allocation25_spill] sm:$0xff] }
 0x2dd   : > { %400 = vadd.xlane.f32.xlu1 %v377_v0  ;;  %v778_v0 = vld [vmem:[#allocation3 + $0x8] sm:$0xff]  ;;  %1732 = vpow2.f32 %v751_v12  ;;  %v2884_v2 = vsub.f32 %v2882_v48, %v2883_v54  ;;  %v791_v48 = vld [vmem:[#allocation3 + $0x70] sm:$0xff] }
 0x2df   : > { %v1721_v27 = vpop.eup %1720  ;;  %v769_v12 = vmul.f32 1.442695, %v2884_v2 }
 0x2e0   : > { %949 = vadd.xlane.f32.xlu0 %v1719_v46  ;;  %v1723_v14 = vpop.eup %1722 }
 0x2e1   : > { %404 = vadd.xlane.f32.xlu1 %v379_v30  ;;  %v794_v26 = vmul.f32 %v1723_v14, %v778_v0  ;;  %v765_v30 = vmul.f32 1.442695, %v2870_v42  ;;  %v1725_v18 = vpop.eup %1724  ;;  %v782_v0 = vld [vmem:[#allocation3 + $0x28] sm:$0xff] }
 0x2e2   : > { %v801_v16 = vmul.f32 %v1725_v18, %v785_v44 }
 0x2e3   : > { %v1727_v10 = vpop.eup %1726  ;;  %1734 = vpow2.f32 %v765_v30 }
 0x2e4   : > { %398 = vadd.xlane.f32.xlu0 %v376_v21  ;;  %1736 = vpow2.f32 %v767_v63  ;;  %v802_v43 = vmul.f32 %v1727_v10, %v786_v56  ;;  %v781_v63 = vld [vmem:[#allocation3 + $0x20] sm:$0xff]  ;;  %v790_v10 = vld [vmem:[#allocation3 + $0x68] sm:$0xff] }
 0x2e5   : > { %408 = vadd.xlane.f32.xlu1 %v381_v34  ;;  %v1729_v21 = vpop.eup %1728  ;;  %1738 = vpow2.f32 %v755_v57  ;;  %v2886_v57 = vld [vmem:[#allocation22_spill] sm:$0xff] }
 0x2e6   : > { %v1731_v23 = vpop.eup %1730  ;;  %v793_v36 = vmul.f32 %v1729_v21, %v777_v3 }
 0x2e7   : > { %v1733_v11 = vpop.eup %1732 }
 0x2e8   : > { %965 = vadd.xlane.f32.xlu0 %v1721_v27 }
 0x2e9   : > { %412 = vadd.xlane.f32.xlu1 %v383_v19  ;;  %v2874_v19 = vsub.f32 %v2873_v13, %v2506_v25 }
 0x2eb   : > { %v753_v51 = vmul.f32 1.442695, %v2874_v19 }
 0x2ec   : > { %402 = vadd.xlane.f32.xlu0 %v378_v15  ;;  %v2875_v15 = vld [vmem:[#allocation23_spill] sm:$0xff] }
 0x2ed   : > { %416 = vadd.xlane.f32.xlu1 %v385_v24  ;;  %v387_v6 = vpop.xlane.xlu0 %386  ;;  %v2876_v24 = vsub.f32 %v2875_v15, %v2541_v58 }
 0x2ee   : > { %v418_v4 = vmul.f32 14.285714, %v387_v6 }
 0x2ef   : > { %v771_v49 = vmul.f32 1.442695, %v2876_v24 }
 0x2f0   : > { %406 = vadd.xlane.f32.xlu0 %v380_v31  ;;  %434 = vst.msk [vmem:[#allocation4] sm:$0xff] %vm305_vm0, %v418_v4  ;;  %v779_v31 = vld [vmem:[#allocation3 + $0x10] sm:$0xff]  ;;  %v780_v4 = vld [vmem:[#allocation3 + $0x18] sm:$0xff] }
 0x2f1   : > { %v391_v17 = vpop.xlane.xlu0 %390  ;;  %v795_v58 = vmul.f32 %v1731_v23, %v779_v31  ;;  %v792_v23 = vld [vmem:[#allocation3 + $0x78] sm:$0xff] }
 0x2f2   : > { %v420_v8 = vmul.f32 14.285714, %v391_v17  ;;  %v2889_v31 = vld [vmem:[#allocation29_spill] sm:$0xff] }
 0x2f4   : > { %410 = vadd.xlane.f32.xlu0 %v382_v35  ;;  %436 = vst.msk [vmem:[#allocation4 + $0x10] sm:$0xff] %vm305_vm0, %v420_v8  ;;  %v2877_v35 = vld [vmem:[#allocation20_spill] sm:$0xff]  ;;  %v1735_v8 = vpop.eup %1734 }
 0x2f5   : > { %v395_v39 = vpop.xlane.xlu0 %394  ;;  %v2878_v50 = vsub.f32 %v2877_v35, %v2522_v62 }
 0x2f6   : > { %v422_v59 = vmul.f32 14.285714, %v395_v39 }
 0x2f7   : > { %v759_v17 = vmul.f32 1.442695, %v2878_v50 }
 0x2f8   : > { %414 = vadd.xlane.f32.xlu0 %v384_v7  ;;  %438 = vst.msk [vmem:[#allocation4 + $0x20] sm:$0xff] %vm305_vm0, %v422_v59  ;;  %v796_v7 = vmul.f32 %v1733_v11, %v780_v4  ;;  %v787_v59 = vld [vmem:[#allocation3 + $0x50] sm:$0xff] }
 0x2f9   : > { %v803_v62 = vmul.f32 %v1735_v8, %v787_v59 }
 0x302   : > { %v389_v29 = vpop.xlane.xlu1 %388 }
 0x303   : > { %v419_v28 = vmul.f32 14.285714, %v389_v29  ;;  %v1737_v29 = vpop.eup %1736 }
 0x304   : > { %v1739_v60 = vpop.eup %1738 }
 0x305   : > { %435 = vst.msk [vmem:[#allocation4 + $0x8] sm:$0xff] %vm305_vm0, %v419_v28  ;;  %v798_v30 = vmul.f32 %v1739_v60, %v782_v0 }
 0x306   : > { %v393_v33 = vpop.xlane.xlu1 %392 }
 0x307   : > { %v421_v9 = vmul.f32 14.285714, %v393_v33 }
 0x309   : > { %437 = vst.msk [vmem:[#allocation4 + $0x18] sm:$0xff] %vm305_vm0, %v421_v9  ;;  %v788_v9 = vld [vmem:[#allocation3 + $0x58] sm:$0xff] }
 0x30a   : > { %v397_v20 = vpop.xlane.xlu1 %396  ;;  %v804_v41 = vmul.f32 %v1737_v29, %v788_v9 }
 0x30b   : > { %v423_v61 = vmul.f32 14.285714, %v397_v20 }
 0x30c   : > { %v1102_v56 = vld [vmem:[#allocation4 + $0x8] sm:$0xff] }
 0x30d   : > { %439 = vst.msk [vmem:[#allocation4 + $0x28] sm:$0xff] %vm305_vm0, %v423_v61  ;;  %v2879_v61 = vld [vmem:[#allocation26_spill] sm:$0xff] }
 0x30e   : > { %v2881_v45 = vsub.f32 %v2879_v61, %v2880_v37 }
 0x310   : > { %v775_v32 = vmul.f32 1.442695, %v2881_v45 }
 0x341   : > { %v940_v47 = vpop.xlane.xlu0 %939 }
 0x342   : > { %v970_v53 = vadd.f32 %v940_v47, %v794_v26 }
 0x344   : > { %987 = vst.msk [vmem:[#allocation3 + $0x8] sm:$0xff] %vm305_vm0, %v970_v53  ;;  %v1022_v53 = vld [vmem:[#allocation2 + $0x8] sm:$0xff] }
 0x349   : > { %v954_v46 = vpop.xlane.xlu0 %953 }
 0x34a   : > { %v956_v34 = vpop.xlane.xlu1 %955  ;;  %v977_v38 = vadd.f32 %v954_v46, %v801_v16  ;;  %v2887_v16 = vsub.f32 %v2885_v1, %v2886_v57 }
 0x34b   : > { %v978_v52 = vadd.f32 %v956_v34, %v802_v43  ;;  %v1038_v27 = vld [vmem:[#allocation3 + $0x8] sm:$0xff] }
 0x34c   : > { %994 = vst.msk [vmem:[#allocation3 + $0x40] sm:$0xff] %vm305_vm0, %v977_v38  ;;  %1740 = vlog2.f32 %v1038_v27  ;;  %v757_v43 = vmul.f32 1.442695, %v2887_v16 }
 0x34d   : > { %995 = vst.msk [vmem:[#allocation3 + $0x48] sm:$0xff] %vm305_vm0, %v978_v52  ;;  %1742 = vpow2.f32 %v753_v51  ;;  %v784_v52 = vld [vmem:[#allocation3 + $0x38] sm:$0xff] }
 0x34e   : > { %v938_v6 = vpop.xlane.xlu1 %937  ;;  %1744 = vpow2.f32 %v771_v49 }
 0x34f   : > { %v969_v25 = vadd.f32 %v938_v6, %v793_v36  ;;  %1746 = vpow2.f32 %v759_v17  ;;  %v2888_v36 = vld [vmem:[#allocation27_spill] sm:$0xff]  ;;  %v789_v17 = vld [vmem:[#allocation3 + $0x60] sm:$0xff] }
 0x350   : > { %1748 = vpow2.f32 %v775_v32  ;;  %v2890_v11 = vsub.f32 %v2888_v36, %v2889_v31 }
 0x351   : > { %986 = vst.msk [vmem:[#allocation3] sm:$0xff] %vm305_vm0, %v969_v25  ;;  %v942_v39 = vpop.xlane.xlu0 %941  ;;  %1750 = vpow2.f32 %v769_v12 }
 0x352   : > { %v944_v28 = vpop.xlane.xlu1 %943  ;;  %v971_v33 = vadd.f32 %v942_v39, %v795_v58  ;;  %1752 = vpow2.f32 %v757_v43  ;;  %v773_v6 = vmul.f32 1.442695, %v2890_v11 }
 0x353   : > { %v972_v20 = vadd.f32 %v944_v28, %v796_v7  ;;  %v783_v28 = vld [vmem:[#allocation3 + $0x30] sm:$0xff]  ;;  %v1045_v60 = vld [vmem:[#allocation3 + $0x40] sm:$0xff] }
 0x354   : > { %988 = vst.msk [vmem:[#allocation3 + $0x10] sm:$0xff] %vm305_vm0, %v971_v33  ;;  %v1046_v25 = vld [vmem:[#allocation3 + $0x48] sm:$0xff] }
 0x355   : > { %989 = vst.msk [vmem:[#allocation3 + $0x18] sm:$0xff] %vm305_vm0, %v972_v20  ;;  %v958_v22 = vpop.xlane.xlu0 %957  ;;  %1754 = vlog2.f32 %v1046_v25 }
 0x356   : > { %v1741_v5 = vpop.eup %1740  ;;  %v960_v40 = vpop.xlane.xlu1 %959  ;;  %v979_v14 = vadd.f32 %v958_v22, %v803_v62  ;;  %1756 = vpow2.f32 %v773_v6 }
 0x357   : > { %v980_v26 = vadd.f32 %v960_v40, %v804_v41  ;;  %v1056_v47 = vmul.f32 0.6931472, %v1741_v5  ;;  %v1743_v42 = vpop.eup %1742 }
 0x358   : > { %996 = vst.msk [vmem:[#allocation3 + $0x50] sm:$0xff] %vm305_vm0, %v979_v14  ;;  %v1745_v18 = vpop.eup %1744  ;;  %v797_v34 = vmul.f32 %v1743_v42, %v781_v63  ;;  %v1037_v58 = vld [vmem:[#allocation3] sm:$0xff] }
 0x359   : > { %997 = vst.msk [vmem:[#allocation3 + $0x58] sm:$0xff] %vm305_vm0, %v980_v26  ;;  %v1086_v55 = vadd.f32 %v1056_v47, %v1022_v53  ;;  %v806_v38 = vmul.f32 %v1745_v18, %v790_v10  ;;  %v1747_v13 = vpop.eup %1746  ;;  %1758 = vlog2.f32 %v1037_v58 }
 0x35a   : > { %v948_v44 = vpop.xlane.xlu1 %947  ;;  %v800_v15 = vmul.f32 %v1747_v13, %v784_v52  ;;  %v1749_v24 = vpop.eup %1748 }
 0x35b   : > { %v974_v46 = vadd.f32 %v948_v44, %v798_v30  ;;  %v1118_v21 = vsub.f32 %v1086_v55, %v1102_v56  ;;  %v1751_v35 = vpop.eup %1750  ;;  %v808_v50 = vmul.f32 %v1749_v24, %v792_v23  ;;  %v1039_v40 = vld [vmem:[#allocation3 + $0x10] sm:$0xff]  ;;  %v1030_v56 = vld [vmem:[#allocation2 + $0x48] sm:$0xff]  ;;  %v1024_v23 = vld [vmem:[#allocation2 + $0x18] sm:$0xff] }
 0x35c   : > { %v805_v39 = vmul.f32 %v1751_v35, %v789_v17  ;;  %v1753_v59 = vpop.eup %1752  ;;  %v1040_v33 = vld [vmem:[#allocation3 + $0x18] sm:$0xff] }
 0x35d   : > { %991 = vst.msk [vmem:[#allocation3 + $0x28] sm:$0xff] %vm305_vm0, %v974_v46  ;;  %1153 = vperm.xlu1 %1688, %v1118_v21   ;;  %v946_v3 = vpop.xlane.xlu0 %945  ;;  %v799_v37 = vmul.f32 %v1753_v59, %v783_v28  ;;  %1760 = vlog2.f32 %v1040_v33  ;;  %v1021_v46 = vld [vmem:[#allocation2] sm:$0xff] }
 0x35e   : > { %v964_v19 = vpop.xlane.xlu1 %963  ;;  %v973_v51 = vadd.f32 %v946_v3, %v797_v34  ;;  %1762 = vlog2.f32 %v1045_v60 }
 0x35f   : > { %v982_v27 = vadd.f32 %v964_v19, %v806_v38  ;;  %v1755_v5 = vpop.eup %1754  ;;  %v1047_v1 = vld [vmem:[#allocation3 + $0x50] sm:$0xff] }
 0x360   : > { %990 = vst.msk [vmem:[#allocation3 + $0x20] sm:$0xff] %vm305_vm0, %v973_v51  ;;  %v1048_v22 = vld [vmem:[#allocation3 + $0x58] sm:$0xff]  ;;  %v1757_v14 = vpop.eup %1756  ;;  %v1072_v53 = vmul.f32 0.6931472, %v1755_v5 }
 0x361   : > { %999 = vst.msk [vmem:[#allocation3 + $0x68] sm:$0xff] %vm305_vm0, %v982_v27  ;;  %1764 = vlog2.f32 %v1048_v22  ;;  %v807_v42 = vmul.f32 %v1757_v14, %v791_v48 }
 0x362   : > { %v952_v49 = vpop.xlane.xlu1 %951  ;;  %1766 = vlog2.f32 %v1039_v40  ;;  %v1094_v16 = vadd.f32 %v1072_v53, %v1030_v56  ;;  %v1026_v40 = vld [vmem:[#allocation2 + $0x28] sm:$0xff]  ;;  %v1103_v53 = vld [vmem:[#allocation4 + $0x10] sm:$0xff] }
 0x363   : > { %v976_v4 = vadd.f32 %v952_v49, %v800_v15  ;;  %v1759_v2 = vpop.eup %1758  ;;  %v1101_v49 = vld [vmem:[#allocation4] sm:$0xff]  ;;  %v1031_v56 = vld [vmem:[#allocation2 + $0x50] sm:$0xff] }
 0x364   : > { %v1042_v54 = vld [vmem:[#allocation3 + $0x28] sm:$0xff]  ;;  %v1054_v55 = vmul.f32 0.6931472, %v1759_v2 }
 0x365   : > { %993 = vst.msk [vmem:[#allocation3 + $0x38] sm:$0xff] %vm305_vm0, %v976_v4  ;;  %1768 = vlog2.f32 %v1042_v54 }
 0x366   : > { %v968_v8 = vpop.xlane.xlu1 %967  ;;  %v1085_v3 = vadd.f32 %v1054_v55, %v1021_v46  ;;  %v1106_v55 = vld [vmem:[#allocation4 + $0x28] sm:$0xff]  ;;  %v1025_v46 = vld [vmem:[#allocation2 + $0x20] sm:$0xff] }
 0x367   : > { %v984_v7 = vadd.f32 %v968_v8, %v808_v50  ;;  %v1761_v18 = vpop.eup %1760  ;;  %v1041_v21 = vld [vmem:[#allocation3 + $0x20] sm:$0xff]  ;;  %v1104_v8 = vld [vmem:[#allocation4 + $0x18] sm:$0xff] }
 0x368   : > { %v1060_v13 = vmul.f32 0.6931472, %v1761_v18  ;;  %v1763_v52 = vpop.eup %1762  ;;  %v1050_v15 = vld [vmem:[#allocation3 + $0x68] sm:$0xff]  ;;  %v1117_v6 = vsub.f32 %v1085_v3, %v1101_v49  ;;  %v1027_v49 = vld [vmem:[#allocation2 + $0x30] sm:$0xff] }
 0x369   : > { %1001 = vst.msk [vmem:[#allocation3 + $0x78] sm:$0xff] %vm305_vm0, %v984_v7  ;;  %v962_v29 = vpop.xlane.xlu0 %961  ;;  %v1070_v50 = vmul.f32 0.6931472, %v1763_v52 }
 0x36a   : > { %v401_v9 = vpop.xlane.xlu1 %400  ;;  %v981_v20 = vadd.f32 %v962_v29, %v805_v39  ;;  %v1088_v4 = vadd.f32 %v1060_v13, %v1024_v23  ;;  %v1029_v29 = vld [vmem:[#allocation2 + $0x40] sm:$0xff] }
 0x36b   : > { %v425_v61 = vmul.f32 14.285714, %v401_v9  ;;  %v1765_v24 = vpop.eup %1764 }
 0x36c   : > { %998 = vst.msk [vmem:[#allocation3 + $0x60] sm:$0xff] %vm305_vm0, %v981_v20  ;;  %v1044_v63 = vld [vmem:[#allocation3 + $0x38] sm:$0xff]  ;;  %v1767_v31 = vpop.eup %1766  ;;  %v1076_v17 = vmul.f32 0.6931472, %v1765_v24  ;;  %v1120_v59 = vsub.f32 %v1088_v4, %v1104_v8  ;;  %v1093_v20 = vadd.f32 %v1070_v50, %v1029_v29 }
 0x36d   : > { %441 = vst.msk [vmem:[#allocation4 + $0x38] sm:$0xff] %vm305_vm0, %v425_v61  ;;  %v950_v45 = vpop.xlane.xlu0 %949  ;;  %1770 = vlog2.f32 %v1044_v63  ;;  %v1058_v7 = vmul.f32 0.6931472, %v1767_v31  ;;  %v1032_v61 = vld [vmem:[#allocation2 + $0x58] sm:$0xff] }
 0x36e   : > { %v405_v32 = vpop.xlane.xlu1 %404  ;;  %v975_v62 = vadd.f32 %v950_v45, %v799_v37  ;;  %1772 = vlog2.f32 %v1047_v1  ;;  %v1096_v60 = vadd.f32 %v1076_v17, %v1032_v61  ;;  %v1028_v63 = vld [vmem:[#allocation2 + $0x38] sm:$0xff] }
 0x36f   : > { %v427_v41 = vmul.f32 14.285714, %v405_v32  ;;  %1774 = vlog2.f32 %v1041_v21  ;;  %v1769_v25 = vpop.eup %1768  ;;  %v1036_v4 = vld [vmem:[#allocation2 + $0x78] sm:$0xff] }
 0x370   : > { %992 = vst.msk [vmem:[#allocation3 + $0x30] sm:$0xff] %vm305_vm0, %v975_v62  ;;  %1776 = vlog2.f32 %v1050_v15  ;;  %v1052_v58 = vld [vmem:[#allocation3 + $0x78] sm:$0xff]  ;;  %v1064_v28 = vmul.f32 0.6931472, %v1769_v25  ;;  %v1105_v15 = vld [vmem:[#allocation4 + $0x20] sm:$0xff] }
 0x371   : > { %443 = vst.msk [vmem:[#allocation4 + $0x48] sm:$0xff] %vm305_vm0, %v427_v41  ;;  %v399_v0 = vpop.xlane.xlu0 %398  ;;  %v1023_v41 = vld [vmem:[#allocation2 + $0x10] sm:$0xff] }
 0x372   : > { %v409_v12 = vpop.xlane.xlu1 %408  ;;  %v424_v26 = vmul.f32 14.285714, %v399_v0  ;;  %v1087_v5 = vadd.f32 %v1058_v7, %v1023_v41  ;;  %v1090_v2 = vadd.f32 %v1064_v28, %v1026_v40  ;;  %v1035_v28 = vld [vmem:[#allocation2 + $0x70] sm:$0xff] }
 0x373   : > { %v429_v47 = vmul.f32 14.285714, %v409_v12  ;;  %v1049_v45 = vld [vmem:[#allocation3 + $0x60] sm:$0xff] }
 0x374   : > { %440 = vst.msk [vmem:[#allocation4 + $0x30] sm:$0xff] %vm305_vm0, %v424_v26 }
 0x375   : > { %445 = vst.msk [vmem:[#allocation4 + $0x58] sm:$0xff] %vm305_vm0, %v429_v47  ;;  %v966_v30 = vpop.xlane.xlu0 %965 }
 0x376   : > { %v413_v44 = vpop.xlane.xlu1 %412  ;;  %v983_v10 = vadd.f32 %v966_v30, %v807_v42  ;;  %v1119_v30 = vsub.f32 %v1087_v5, %v1103_v53 }
 0x377   : > { %v431_v57 = vmul.f32 14.285714, %v413_v44  ;;  %v1043_v36 = vld [vmem:[#allocation3 + $0x30] sm:$0xff]  ;;  %v1771_v33 = vpop.eup %1770 }
 0x378   : > { %1000 = vst.msk [vmem:[#allocation3 + $0x70] sm:$0xff] %vm305_vm0, %v983_v10  ;;  %v1110_v43 = vld [vmem:[#allocation4 + $0x48] sm:$0xff]  ;;  %1778 = vlog2.f32 %v1043_v36  ;;  %v1773_v32 = vpop.eup %1772  ;;  %v1068_v12 = vmul.f32 0.6931472, %v1771_v33  ;;  %v1122_v10 = vsub.f32 %v1090_v2, %v1106_v55 }
 0x379   : > { %447 = vst.msk [vmem:[#allocation4 + $0x68] sm:$0xff] %vm305_vm0, %v431_v57  ;;  %v403_v34 = vpop.xlane.xlu0 %402  ;;  %v1126_v38 = vsub.f32 %v1094_v16, %v1110_v43  ;;  %1780 = vlog2.f32 %v1052_v58  ;;  %v1775_v0 = vpop.eup %1774  ;;  %v1074_v47 = vmul.f32 0.6931472, %v1773_v32  ;;  %v1108_v43 = vld [vmem:[#allocation4 + $0x38] sm:$0xff] }
 0x37a   : > { %v417_v19 = vpop.xlane.xlu1 %416  ;;  %v426_v51 = vmul.f32 14.285714, %v403_v34  ;;  %1782 = vlog2.f32 %v1049_v45  ;;  %v1777_v42 = vpop.eup %1776  ;;  %v1062_v18 = vmul.f32 0.6931472, %v1775_v0  ;;  %v1092_v57 = vadd.f32 %v1068_v12, %v1028_v63 }
 0x37b   : > { %v433_v27 = vmul.f32 14.285714, %v417_v19  ;;  %1177 = vperm.xlu0 %1689, %v1126_v38   ;;  %v1095_v16 = vadd.f32 %v1074_v47, %v1031_v56  ;;  %v1080_v21 = vmul.f32 0.6931472, %v1777_v42  ;;  %v1107_v50 = vld [vmem:[#allocation4 + $0x30] sm:$0xff] }
 0x37c   : > { %442 = vst.msk [vmem:[#allocation4 + $0x40] sm:$0xff] %vm305_vm0, %v426_v51  ;;  %v1112_v37 = vld [vmem:[#allocation4 + $0x58] sm:$0xff]  ;;  %v1089_v3 = vadd.f32 %v1062_v18, %v1025_v46  ;;  %v1124_v19 = vsub.f32 %v1092_v57, %v1108_v43  ;;  %v1034_v51 = vld [vmem:[#allocation2 + $0x68] sm:$0xff] }
 0x37d   : > { %449 = vst.msk [vmem:[#allocation4 + $0x78] sm:$0xff] %vm305_vm0, %v433_v27  ;;  %v407_v11 = vpop.xlane.xlu0 %406  ;;  %v1128_v54 = vsub.f32 %v1096_v60, %v1112_v37  ;;  %v1098_v24 = vadd.f32 %v1080_v21, %v1034_v51  ;;  %v2891_v60 = vld [vmem:[#allocation18_spill] sm:$0xff] }
 0x37e   : > { %v428_v35 = vmul.f32 14.285714, %v407_v11  ;;  %v1121_v36 = vsub.f32 %v1089_v3, %v1105_v15  ;;  %v1208_v41 = vadd.s32 4294967280, %v2891_v60  ;;  %v1201_v40 = vadd.s32 4294967288, %v2891_v60 }
 0x37f   : > { %1150 = vperm.xlu0 %1689, %v1117_v6   ;;  %v1051_v14 = vld [vmem:[#allocation3 + $0x70] sm:$0xff]  ;;  %v1215_v12 = vadd.s32 4294967272, %v2891_v60  ;;  %v1222_v53 = vadd.s32 4294967264, %v2891_v60  ;;  %v1229_v18 = vadd.s32 4294967256, %v2891_v60  ;;  %v1236_v56 = vadd.s32 4294967248, %v2891_v60 }
 0x380   : > { %444 = vst.msk [vmem:[#allocation4 + $0x50] sm:$0xff] %vm305_vm0, %v428_v35  ;;  %1784 = vlog2.f32 %v1051_v14  ;;  %v1114_v52 = vld [vmem:[#allocation4 + $0x68] sm:$0xff]  ;;  %v1250_v43 = vadd.s32 4294967232, %v2891_v60 }
 0x381   : > { %v411_v39 = vpop.xlane.xlu0 %410  ;;  %v1130_v6 = vsub.f32 %v1098_v24, %v1114_v52 }
 0x382   : > { %v430_v9 = vmul.f32 14.285714, %v411_v39  ;;  %v1779_v44 = vpop.eup %1778  ;;  %v1033_v39 = vld [vmem:[#allocation2 + $0x60] sm:$0xff] }
 0x383   : > { %1159 = vperm.xlu0 %1689, %v1120_v59   ;;  %v1109_v62 = vld [vmem:[#allocation4 + $0x40] sm:$0xff]  ;;  %v1781_v34 = vpop.eup %1780  ;;  %v1066_v13 = vmul.f32 0.6931472, %v1779_v44 }
 0x384   : > { %446 = vst.msk [vmem:[#allocation4 + $0x60] sm:$0xff] %vm305_vm0, %v430_v9  ;;  %v1125_v22 = vsub.f32 %v1093_v20, %v1109_v62  ;;  %v1783_v27 = vpop.eup %1782  ;;  %v1084_v23 = vmul.f32 0.6931472, %v1781_v34  ;;  %v1116_v25 = vld [vmem:[#allocation4 + $0x78] sm:$0xff] }
 0x385   : > { %v415_v48 = vpop.xlane.xlu0 %414  ;;  %v1091_v31 = vadd.f32 %v1066_v13, %v1027_v49  ;;  %v1078_v35 = vmul.f32 0.6931472, %v1783_v27 }
 0x386   : > { %v432_v26 = vmul.f32 14.285714, %v415_v48  ;;  %1174 = vperm.xlu1 %1688, %v1125_v22   ;;  %v1100_v17 = vadd.f32 %v1084_v23, %v1036_v4  ;;  %v2892_v22 = vlaneseq }
 0x387   : > { %1183 = vperm.xlu0 %1689, %v1128_v54   ;;  %v1111_v1 = vld [vmem:[#allocation4 + $0x50] sm:$0xff]  ;;  %v1123_v58 = vsub.f32 %v1091_v31, %v1107_v50  ;;  %v1097_v29 = vadd.f32 %v1078_v35, %v1033_v39 }
 0x388   : > { %448 = vst.msk [vmem:[#allocation4 + $0x70] sm:$0xff] %vm305_vm0, %v432_v26  ;;  %v1127_v38 = vsub.f32 %v1095_v16, %v1111_v1  ;;  %v1132_v7 = vsub.f32 %v1100_v17, %v1116_v25  ;;  %v2715_v5 = vshrl.u32 %v2892_v22, 7  ;;  %v1257_v1 = vadd.s32 4294967224, %v2891_v60 }
 0x389   : > { %v1243_v16 = vadd.s32 4294967240, %v2891_v60  ;;  %v1292_v17 = vadd.s32 4294967184, %v2891_v60  ;;  %vm1304_vm0 = vcmask 1048512  }
 0x38a   : > { %1156 = vperm.xlu1 %1688, %v1119_v30   ;;  %v1785_v11 = vpop.eup %1784  ;;  %v1199_v48 = vsub.s32 %v2891_v60, %v2715_v5  ;;  %v1211_v54 = vsub.s32 %v1208_v41, %v2715_v5  ;;  %v1204_v2 = vsub.s32 %v1201_v40, %v2715_v5  ;;  %v1218_v63 = vsub.s32 %v1215_v12, %v2715_v5 }
 0x38b   : > { %1165 = vperm.xlu0 %1689, %v1122_v10   ;;  %v1082_v8 = vmul.f32 0.6931472, %v1785_v11  ;;  %v1113_v59 = vld [vmem:[#allocation4 + $0x60] sm:$0xff]  ;;  %v1225_v10 = vsub.s32 %v1222_v53, %v2715_v5  ;;  %v1232_v3 = vsub.s32 %v1229_v18, %v2715_v5  ;;  %v1239_v52 = vsub.s32 %v1236_v56, %v2715_v5 }
 0x38c   : > { %v1129_v33 = vsub.f32 %v1097_v29, %v1113_v59  ;;  %v1260_v27 = vsub.s32 %v1257_v1, %v2715_v5  ;;  %v1246_v15 = vsub.s32 %v1243_v16, %v2715_v5  ;;  %v1253_v49 = vsub.s32 %v1250_v43, %v2715_v5 }
 0x38d   : > { %v1099_v9 = vadd.f32 %v1082_v8, %v1035_v28 }
 0x38e   : > { %1180 = vperm.xlu1 %1688, %v1127_v38   ;;  %v1271_v38 = vadd.s32 4294967208, %v2891_v60 }
 0x38f   : > { %1171 = vperm.xlu0 %1689, %v1124_v19   ;;  %v1115_v20 = vld [vmem:[#allocation4 + $0x70] sm:$0xff]  ;;  %v1264_v19 = vadd.s32 4294967216, %v2891_v60 }
 0x390   : > { %v1131_v61 = vsub.f32 %v1099_v9, %v1115_v20  ;;  %v1274_v31 = vsub.s32 %v1271_v38, %v2715_v5 }
 0x391   : > { %v1267_v25 = vsub.s32 %v1264_v19, %v2715_v5 }
 0x392   : > { %1162 = vperm.xlu1 %1688, %v1121_v36   ;;  %v1278_v36 = vadd.s32 4294967200, %v2891_v60 }
 0x393   : > { %1189 = vperm.xlu0 %1689, %v1130_v6   ;;  %v1285_v6 = vadd.s32 4294967192, %v2891_v60 }
 0x394   : > { %v1281_v29 = vsub.s32 %v1278_v36, %v2715_v5 }
 0x396   : > { %1168 = vperm.xlu1 %1688, %v1123_v58  }
 0x397   : > { %1195 = vperm.xlu0 %1689, %v1132_v7   ;;  %v1299_v7 = vadd.s32 4294967176, %v2891_v60 }
 0x399   : > { %v1302_v60 = vsub.s32 %v1299_v7, %v2715_v5 }
 0x39a   : > { %1186 = vperm.xlu1 %1688, %v1129_v33   ;;  %v1288_v33 = vsub.s32 %v1285_v6, %v2715_v5 }
 0x39e   : > { %1192 = vperm.xlu1 %1688, %v1131_v61  }
 0x3dc   : > { %v1154_v32 = vpop.permute.xlu1 %1153 }
 0x3dd   : > { %v1205_v55 = vrot.slane %v1154_v32, %v1204_v2  ;;  %v1295_v32 = vsub.s32 %v1292_v17, %v2715_v5 }
 0x3fa   : > { %v2711_v37 = vpop.permute.xlu0 %1177 }
 0x3fb   : > { %v1261_v28 = vrot.slane %v2711_v37, %v1260_v27 }
 0x3fe   : > { %v1151_v45 = vpop.permute.xlu0 %1150 }
 0x3ff   : > { %v1200_v42 = vrot.slane %v1151_v45, %v1199_v48 }
 0x401   : > { %v1207_v57 = vsel %vm1206_vm2, %v1205_v55, %v1200_v42 }
 0x402   : > { %v1160_v62 = vpop.permute.xlu0 %1159 }
 0x403   : > { %v1219_v34 = vrot.slane %v1160_v62, %v1218_v63 }
 0x405   : > { %v1175_v14 = vpop.permute.xlu1 %1174 }
 0x406   : > { %v2718_v0 = vpop.permute.xlu0 %1183  ;;  %v1254_v39 = vrot.slane %v1175_v14, %v1253_v49 }
 0x407   : > { %v1275_v62 = vrot.slane %v2718_v0, %v1274_v31 }
 0x409   : > { %v1157_v26 = vpop.permute.xlu1 %1156 }
 0x40a   : > { %v1166_v47 = vpop.permute.xlu0 %1165  ;;  %v1212_v30 = vrot.slane %v1157_v26, %v1211_v54 }
 0x40b   : > { %v1233_v11 = vrot.slane %v1166_v47, %v1232_v3 }
 0x40c   : > { %v1214_v46 = vsel %vm1213_vm3, %v1212_v30, %v1207_v57 }
 0x40d   : > { %v1181_v44 = vpop.permute.xlu1 %1180  ;;  %v1221_v24 = vsel %vm1220_vm4, %v1219_v34, %v1214_v46 }
 0x40e   : > { %v1172_v21 = vpop.permute.xlu0 %1171  ;;  %v1268_v61 = vrot.slane %v1181_v44, %v1267_v25 }
 0x40f   : > { %v1247_v58 = vrot.slane %v1172_v21, %v1246_v15 }
 0x411   : > { %v1163_v13 = vpop.permute.xlu1 %1162 }
 0x412   : > { %v1226_v51 = vrot.slane %v1163_v13, %v1225_v10  ;;  %v1190_v35 = vpop.permute.xlu0 %1189 }
 0x413   : > { %v1289_v14 = vrot.slane %v1190_v35, %v1288_v33 }
 0x414   : > { %v1228_v23 = vsel %vm1227_vm5, %v1226_v51, %v1221_v24 }
 0x415   : > { %v1169_v4 = vpop.permute.xlu1 %1168  ;;  %v1235_v8 = vsel %vm1234_vm6, %v1233_v11, %v1228_v23 }
 0x416   : > { %v1240_v50 = vrot.slane %v1169_v4, %v1239_v52  ;;  %v1196_v22 = vpop.permute.xlu0 %1195 }
 0x417   : > { %v1303_v12 = vrot.slane %v1196_v22, %v1302_v60 }
 0x418   : > { %v1242_v59 = vsel %vm1241_vm7, %v1240_v50, %v1235_v8 }
 0x419   : > { %v1249_v9 = vsel %vm1248_vm8, %v1247_v58, %v1242_v59  ;;  %v1187_v20 = vpop.permute.xlu1 %1186 }
 0x41a   : > { %v1256_v45 = vsel %vm1255_vm9, %v1254_v39, %v1249_v9  ;;  %v1282_v40 = vrot.slane %v1187_v20, %v1281_v29 }
 0x41b   : > { %v1263_v41 = vsel %vm1262_vm10, %v1261_v28, %v1256_v45 }
 0x41c   : > { %v1270_v37 = vsel %vm1269_vm11, %v1268_v61, %v1263_v41 }
 0x41d   : > { %v1277_v48 = vsel %vm1276_vm12, %v1275_v62, %v1270_v37  ;;  %v1193_v54 = vpop.permute.xlu1 %1192 }
 0x41e   : > { %v1284_v2 = vsel %vm1283_vm13, %v1282_v40, %v1277_v48  ;;  %v1296_v0 = vrot.slane %v1193_v54, %v1295_v32 }
 0x41f   : > { %v1291_v5 = vsel %vm1290_vm14, %v1289_v14, %v1284_v2 }
 0x420   : > { %v1298_v26 = vsel %vm1297_vm15, %v1296_v0, %v1291_v5 }
 0x421   : > { %v1305_v47 = vsel %vm1304_vm0, %v1303_v12, %v1298_v26 }
 0x422   : > { %1307 = vst [vmem:[%s297_s16] sm:$0x1] %v1305_v47 }
 0x423   : > { %1889 = shalt.err (!%p1886_p13)
}
 0x424   : > { %s1890_s28 = scalar_lea.hbm %s2757_s30, 16  ;;  %s1894_s21 = scalar_lea.hbm %s2809_s3, 32 }
 0x425   : > { %p1891_p11 = scmp.ne.s32.totalorder %s2757_s30, %s1890_s28  ;;  %p1895_p7 = scmp.lt.u32.totalorder %s2757_s30, %s2809_s3 }
 0x426   : > { %p1896_p4 = scmp.lt.u32.totalorder %s1894_s21, %s1890_s28  ;;  %p1898_p0 = scmp.lt.u32.totalorder %s1890_s28, %s2757_s30 }
 0x427   : > { %p1892_p2 = pnand %p1891_p11, %p2893_p10 }
 0x428   : > { %p1897_p3 = por %p1896_p4, %p1895_p7 }
 0x429   : > { %p1893_p5 = pneg %p1892_p2 }
 0x42a   : > { %p1899_p8 = por %p1898_p0, %p1897_p3 }
 0x42c   : > { %p1900_p9 = pnand %p1899_p8, %p1893_p5 }
 0x42e   : > { %1903 = shalt.err (!%p1900_p9)
}
 0x42f   : > { %1617 = dma.vmem_to_hbm [thread:$0]  (%p2893_p10), %s2759_s20, 16, %s2757_s30, %s1309_s15  }
 0x430 PF: > { %s1334_s22 = sand.u32 1, %s1942_s12   ;;  %p2894_p12 = scmp.ne.s32.totalorder %s2840_s27, 0 }
 0x431   : > { %p2895_p1 = scmp.ge.s32.totalorder %s1962_s17, 2  ;;  %s1335_s11 = scalar_lea.sflag [#allocation7], %s1334_s22 }
 0x433   : > { %p1630_p6 = pnand %p2895_p1, %p2894_p12 }
 0x435   : > { %1937 = dma.done.wait (!%p1630_p6), %s1335_s11, 16  }
 0x436   : > { %1939 = vsyncadd (!%p1630_p6), %s1335_s11, 4294967280  ;;  %s22_s17 = sadd.s32 1, %s1962_s17   ;;  %s2896_s25 = sld [smem:[#allocation17_spill]] }
 0x437   : > { %p19_p13 = scmp.ge.s32.totalorder %s22_s17, 4   ;;  %s2897_s15 = sld [smem:[#allocation15_spill]] }
 0x438   : > { %s2898_s16 = sld [smem:[#allocation16_spill]]  ;;  %s2899_s12 = smov %s1946_s13 }
 0x439   : > { %s2900_s13 = smov %s1950_s14  ;;  %21 = sbr.rel (!%p19_p13) target bundleno = 10 (0xa), region = 109 }
 0x43c   : > { %s2901_s14 = smov %s2896_s25 }
 0x440   :  { %1339 = vsyncpa [#allocation6], 1 }
 0x441   :  { %1341 = vsyncpa [#allocation6 + $0x1], 1 }
 0x442   :  { %1342 = vsyncpa [#allocation9], 1 }
 0x443   :  { %1344 = vsyncpa [#allocation9 + $0x1], 1 }
 0x444   :  { %1345 = vsyncpa [#allocation7], 1 }
 0x445   :  { %1347 = vsyncpa [#allocation7 + $0x1], 1 }

</bundles_post_ra>
